<compile_context>
chip_gen: v5e
topology: v5e:2x2
jax: 0.10.0
libtpu: 0.0.40
codegen_flags: <defaults>
</compile_context>

<pallas_src>
import functools

import numpy as np
import jax
import jax.numpy as jnp
from jax import lax
from jax.experimental import pallas as pl
from jax.experimental.pallas import tpu as pltpu

# Layer widths of Model3: in_features -> 32 -> 64 -> 128 -> 256 -> 128 -> 64 -> 32 -> 1
HIDDEN = (32, 64, 128, 256, 128, 64, 32, 1)
LANE = 128


def _round_up(x, m):
    return ((x + m - 1) // m) * m


def make_plan(in_features):
    """Static weight-slab packing plan.

    Returns (plan, total_rows).  plan[l] = (out_pad, blocks); blocks is a tuple of
    (slab_row_start, act_col_start, col_width) column blocks for layer l.  The activation
    entering layer l has width in_features for l == 0 and plan[l-1][0] afterwards, so every
    contraction after layer 0 is a full, aligned 128-lane pass.
    """
    dims = (in_features,) + HIDDEN
    n_layers = len(HIDDEN)
    plan = []
    row = 0
    src_width = in_features
    for l in range(n_layers):
        d_out = dims[l + 1]
        last = l == n_layers - 1
        out_pad = _round_up(d_out, 16) if last else _round_up(d_out, LANE)
        blocks = []
        n_cb = (src_width + LANE - 1) // LANE
        for c in range(n_cb):
            col_start = c * LANE
            col_w = min(LANE, src_width - col_start)
            blocks.append((row, col_start, col_w))
            row += out_pad
        plan.append((out_pad, tuple(blocks)))
        src_width = out_pad
    return tuple(plan), row


def pack_params(params, in_features, w_dtype=jnp.bfloat16):
    """Pack per-layer (W[out, in], b[out]) (PyTorch layout) into aligned slabs.

    Host-side numpy; call ONCE and reuse the slabs for every forward call.
    """
    plan, total_rows = make_plan(in_features)
    n_layers = len(HIDDEN)
    max_out_pad = max(p[0] for p in plan)
    w_slab = np.zeros((total_rows, LANE), np.float32)
    b_slab = np.zeros((max_out_pad, n_layers), np.float32)
    for l, (w, b) in enumerate(params):
        w = np.asarray(w, np.float32)
        b = np.asarray(b, np.float32)
        d_out, d_in = w.shape
        out_pad, blocks = plan[l]
        for (row_start, col_start, col_w) in blocks:
            cw = min(col_w, max(0, d_in - col_start))
            if cw > 0:
                w_slab[row_start:row_start + d_out, :cw] = w[:, col_start:col_start + cw]
        b_slab[:d_out, l] = b
    return jnp.asarray(w_slab, w_dtype), jnp.asarray(b_slab, jnp.float32), plan


def mlp_kernel(x_ref, w_ref, b_ref, o_ref, *, plan):
    """Fused 8-layer MLP forward for one batch tile (all params resident in VMEM).

    x_ref: (bt, F)      input tile, batch on sublanes
    w_ref: (R, 128)     aligned bf16 weight slab, static per-layer row offsets
    b_ref: (256, L)     f32 bias columns (one column per layer)
    o_ref: (1, bt)      lane-dense output tile
    """
    n_layers = len(plan)
    compute_dtype = w_ref.dtype
    h = x_ref[...].astype(jnp.float32)                          # (bt, F)
    for l, (out_pad, blocks) in enumerate(plan):
        hs = h.astype(compute_dtype)                            # bf16 MXU operands
        y = None
        for (row_start, col_start, col_w) in blocks:
            w_blk = w_ref[row_start:row_start + out_pad, 0:col_w]
            if l == 0:
                # Contract x's feature axis directly: (out_pad, cw) x (bt, cw)^T -> (out_pad, bt)
                part = lax.dot_general(
                    w_blk, hs[:, col_start:col_start + col_w],
                    dimension_numbers=(((1,), (1,)), ((), ())),
                    preferred_element_type=jnp.float32)
            else:
                # Batch already on lanes: (out_pad, 128) x (128, bt) -> (out_pad, bt)
                part = jnp.dot(w_blk, hs[col_start:col_start + col_w, :],
                               preferred_element_type=jnp.float32)
            y = part if y is None else y + part
        y = y + b_ref[0:out_pad, l:l + 1]                       # (out_pad, 1) bcast over lanes
        if l < n_layers - 1:
            h = jnp.maximum(y, 0.0)                             # padded rows stay exactly 0
        else:
            o_ref[...] = jax.nn.sigmoid(y[0:1, :]).astype(o_ref.dtype)


def _choose_tiling(B):
    """Return (padded_B, batch_tile, num_tiles)."""
    if B < 256:
        return B, B, 1                      # single step; blocks equal full array dims
    Bp = _round_up(B, 256)
    # Cap tile at 2048 (fits v5e's 16 MiB default scoped VMEM with double-buffering); keep
    # >= 2 grid steps so ("parallel",) shards across v7x's two TensorCores.
    for t in (2048, 1024, 512, 256, 128):
        if Bp % t == 0 and Bp // t >= 2:
            return Bp, t, Bp // t
    return Bp, 128, Bp // 128               # unreachable: Bp is a multiple of 256


def model3_forward(x, w_slab, b_slab, plan):
    """x: [B, F] float32.  w_slab / b_slab / plan come from pack_params()."""
    B, F = x.shape
    n_layers = len(plan)
    total_rows = w_slab.shape[0]
    max_out_pad = b_slab.shape[0]

    Bp, bt, num_tiles = _choose_tiling(B)
    if Bp != B:
        x = jnp.pad(x, ((0, Bp - B), (0, 0)))   # padded rows are sliced off after the kernel

    out = pl.pallas_call(
        functools.partial(mlp_kernel, plan=plan),
        grid=(num_tiles,),
        in_specs=[
            pl.BlockSpec((bt, F), lambda i: (i, 0)),
            pl.BlockSpec((total_rows, LANE), lambda i: (0, 0)),      # fetched once, reused
            pl.BlockSpec((max_out_pad, n_layers), lambda i: (0, 0)),  # fetched once, reused
        ],
        out_specs=pl.BlockSpec((1, bt), lambda i: (0, i)),
        out_shape=jax.ShapeDtypeStruct((1, Bp), jnp.float32),
        compiler_params=pltpu.CompilerParams(dimension_semantics=("parallel",)),
    )(x, w_slab, b_slab)
    return out[0, :B].reshape(B, 1)


def init_params(in_features, key):
    """Deterministic init mimicking nn.Linear's U(-1/sqrt(fan_in), 1/sqrt(fan_in)).
    Weights stored in PyTorch's native [out, in] layout."""
    params = []
    fan_in = in_features
    for out_dim in HIDDEN:
        key, kw, kb = jax.random.split(key, 3)
        bound = 1.0 / jnp.sqrt(jnp.float32(fan_in))
        w = jax.random.uniform(kw, (out_dim, fan_in), jnp.float32, -bound, bound)
        b = jax.random.uniform(kb, (out_dim,), jnp.float32, -bound, bound)
        params.append((w, b))
        fan_in = out_dim
    return params


def reference_forward(x, params):
    h = x
    for (w, b) in params[:-1]:
        h = jnp.maximum(h @ w.T + b, 0.0)
    w, b = params[-1]
    return jax.nn.sigmoid(h @ w.T + b)


if __name__ == "__main__":
    in_features = 16

    key = jax.random.PRNGKey(0)
    key, kp = jax.random.split(key)
    params = init_params(in_features, kp)
    # Packing is hoisted out of the per-call path: done once, reused for every forward.
    w_slab, b_slab, plan = pack_params(params, in_features)

    # Check both the single-tile path (B=16) and the padded multi-tile path (B=300 -> 2 tiles).
    for batch in (16, 300):
        key, kx = jax.random.split(key)
        x = jax.random.normal(kx, (batch, in_features), jnp.float32)
        out = jax.block_until_ready(model3_forward(x, w_slab, b_slab, plan))
        ref = reference_forward(x, params)
        assert out.shape == (batch, 1)
        # bf16 matmul operands (f32 accumulation) -> loosened tolerance vs the f32 reference.
        assert jnp.allclose(out, ref, atol=2e-2, rtol=2e-2), f"mismatch vs reference (B={batch})"

    print("KERNEL_OK")
</pallas_src>

<mosaic_0001>
module attributes {stable_mosaic.version = 11 : i64} {
  func.func @mlp_kernel(%arg0: i32, %arg1: memref<16x16xf32, #tpu.memory_space<vmem>>, %arg2: memref<1168x128xbf16, #tpu.memory_space<vmem>>, %arg3: memref<256x8xf32, #tpu.memory_space<vmem>>, %arg4: memref<1x16xf32, #tpu.memory_space<vmem>>) attributes {dimension_semantics = [#tpu.dimension_semantics<parallel>], iteration_bounds = array<i64: 1>, scalar_prefetch = 0 : i64, scratch_operands = 0 : i64, tpu.core_type = #tpu.core_type<tc>, window_params = [{transform_indices = @transform_0, window_bounds = array<i64: 16, 16>}, {pipeline_mode = #tpu.pipeline_mode<synchronous>, transform_indices = @transform_1, window_bounds = array<i64: 1168, 128>}, {pipeline_mode = #tpu.pipeline_mode<synchronous>, transform_indices = @transform_2, window_bounds = array<i64: 256, 8>}, {transform_indices = @transform_3, window_bounds = array<i64: 1, 16>}]} {
    %c0 = arith.constant 0 : index
    %c0_0 = arith.constant 0 : index
    %0 = vector.load %arg1[%c0, %c0_0] : memref<16x16xf32, #tpu.memory_space<vmem>>, vector<16x16xf32>
    %1 = arith.truncf %0 : vector<16x16xf32> to vector<16x16xbf16>
    %c0_1 = arith.constant 0 : index
    %c0_2 = arith.constant 0 : index
    %2 = vector.load %arg2[%c0_1, %c0_2] : memref<1168x128xbf16, #tpu.memory_space<vmem>>, vector<128x16xbf16>
    %cst = arith.constant dense<0.000000e+00> : vector<128x16xf32>
    %3 = tpu.matmul %2, %1, %cst {dimension_numbers = #tpu.dot_dimension_numbers<[1], [1], [0], [0], [0, 0, 1, 0], [], []>} : vector<128x16xbf16>, vector<16x16xbf16>, vector<128x16xf32> -> vector<128x16xf32>
    %c0_3 = arith.constant 0 : index
    %c0_4 = arith.constant 0 : index
    %4 = vector.load %arg3[%c0_3, %c0_4] : memref<256x8xf32, #tpu.memory_space<vmem>>, vector<128x1xf32>
    %5 = vector.broadcast %4 : vector<128x1xf32> to vector<128x16xf32>
    %6 = arith.addf %3, %5 : vector<128x16xf32>
    %cst_5 = arith.constant 0.000000e+00 : f32
    %7 = vector.broadcast %cst_5 : f32 to vector<128x16xf32>
    %8 = arith.maximumf %6, %7 : vector<128x16xf32>
    %9 = arith.truncf %8 : vector<128x16xf32> to vector<128x16xbf16>
    %c128 = arith.constant 128 : index
    %c0_6 = arith.constant 0 : index
    %10 = vector.load %arg2[%c128, %c0_6] : memref<1168x128xbf16, #tpu.memory_space<vmem>>, vector<128x128xbf16>
    %cst_7 = arith.constant dense<0.000000e+00> : vector<128x16xf32>
    %11 = tpu.matmul %10, %9, %cst_7 {dimension_numbers = #tpu.dot_dimension_numbers<[1], [0], [0], [1], [0, 0, 1, 1], [], []>} : vector<128x128xbf16>, vector<128x16xbf16>, vector<128x16xf32> -> vector<128x16xf32>
    %c0_8 = arith.constant 0 : index
    %c1 = arith.constant 1 : index
    %12 = vector.load %arg3[%c0_8, %c1] : memref<256x8xf32, #tpu.memory_space<vmem>>, vector<128x1xf32>
    %13 = vector.broadcast %12 : vector<128x1xf32> to vector<128x16xf32>
    %14 = arith.addf %11, %13 : vector<128x16xf32>
    %cst_9 = arith.constant 0.000000e+00 : f32
    %15 = vector.broadcast %cst_9 : f32 to vector<128x16xf32>
    %16 = arith.maximumf %14, %15 : vector<128x16xf32>
    %17 = arith.truncf %16 : vector<128x16xf32> to vector<128x16xbf16>
    %c256 = arith.constant 256 : index
    %c0_10 = arith.constant 0 : index
    %18 = vector.load %arg2[%c256, %c0_10] : memref<1168x128xbf16, #tpu.memory_space<vmem>>, vector<128x128xbf16>
    %cst_11 = arith.constant dense<0.000000e+00> : vector<128x16xf32>
    %19 = tpu.matmul %18, %17, %cst_11 {dimension_numbers = #tpu.dot_dimension_numbers<[1], [0], [0], [1], [0, 0, 1, 1], [], []>} : vector<128x128xbf16>, vector<128x16xbf16>, vector<128x16xf32> -> vector<128x16xf32>
    %c0_12 = arith.constant 0 : index
    %c2 = arith.constant 2 : index
    %20 = vector.load %arg3[%c0_12, %c2] : memref<256x8xf32, #tpu.memory_space<vmem>>, vector<128x1xf32>
    %21 = vector.broadcast %20 : vector<128x1xf32> to vector<128x16xf32>
    %22 = arith.addf %19, %21 : vector<128x16xf32>
    %cst_13 = arith.constant 0.000000e+00 : f32
    %23 = vector.broadcast %cst_13 : f32 to vector<128x16xf32>
    %24 = arith.maximumf %22, %23 : vector<128x16xf32>
    %25 = arith.truncf %24 : vector<128x16xf32> to vector<128x16xbf16>
    %c384 = arith.constant 384 : index
    %c0_14 = arith.constant 0 : index
    %26 = vector.load %arg2[%c384, %c0_14] : memref<1168x128xbf16, #tpu.memory_space<vmem>>, vector<256x128xbf16>
    %cst_15 = arith.constant dense<0.000000e+00> : vector<256x16xf32>
    %27 = tpu.matmul %26, %25, %cst_15 {dimension_numbers = #tpu.dot_dimension_numbers<[1], [0], [0], [1], [0, 0, 1, 1], [], []>} : vector<256x128xbf16>, vector<128x16xbf16>, vector<256x16xf32> -> vector<256x16xf32>
    %c0_16 = arith.constant 0 : index
    %c3 = arith.constant 3 : index
    %28 = vector.load %arg3[%c0_16, %c3] : memref<256x8xf32, #tpu.memory_space<vmem>>, vector<256x1xf32>
    %29 = vector.broadcast %28 : vector<256x1xf32> to vector<256x16xf32>
    %30 = arith.addf %27, %29 : vector<256x16xf32>
    %cst_17 = arith.constant 0.000000e+00 : f32
    %31 = vector.broadcast %cst_17 : f32 to vector<256x16xf32>
    %32 = arith.maximumf %30, %31 : vector<256x16xf32>
    %33 = arith.truncf %32 : vector<256x16xf32> to vector<256x16xbf16>
    %c640 = arith.constant 640 : index
    %c0_18 = arith.constant 0 : index
    %34 = vector.load %arg2[%c640, %c0_18] : memref<1168x128xbf16, #tpu.memory_space<vmem>>, vector<128x128xbf16>
    %35 = vector.extract_strided_slice %33 {offsets = [0, 0], sizes = [128, 16], strides = [1, 1]} : vector<256x16xbf16> to vector<128x16xbf16>
    %cst_19 = arith.constant dense<0.000000e+00> : vector<128x16xf32>
    %36 = tpu.matmul %34, %35, %cst_19 {dimension_numbers = #tpu.dot_dimension_numbers<[1], [0], [0], [1], [0, 0, 1, 1], [], []>} : vector<128x128xbf16>, vector<128x16xbf16>, vector<128x16xf32> -> vector<128x16xf32>
    %c768 = arith.constant 768 : index
    %c0_20 = arith.constant 0 : index
    %37 = vector.load %arg2[%c768, %c0_20] : memref<1168x128xbf16, #tpu.memory_space<vmem>>, vector<128x128xbf16>
    %38 = vector.extract_strided_slice %33 {offsets = [128, 0], sizes = [128, 16], strides = [1, 1]} : vector<256x16xbf16> to vector<128x16xbf16>
    %cst_21 = arith.constant dense<0.000000e+00> : vector<128x16xf32>
    %39 = tpu.matmul %37, %38, %cst_21 {dimension_numbers = #tpu.dot_dimension_numbers<[1], [0], [0], [1], [0, 0, 1, 1], [], []>} : vector<128x128xbf16>, vector<128x16xbf16>, vector<128x16xf32> -> vector<128x16xf32>
    %40 = arith.addf %36, %39 : vector<128x16xf32>
    %c0_22 = arith.constant 0 : index
    %c4 = arith.constant 4 : index
    %41 = vector.load %arg3[%c0_22, %c4] : memref<256x8xf32, #tpu.memory_space<vmem>>, vector<128x1xf32>
    %42 = vector.broadcast %41 : vector<128x1xf32> to vector<128x16xf32>
    %43 = arith.addf %40, %42 : vector<128x16xf32>
    %cst_23 = arith.constant 0.000000e+00 : f32
    %44 = vector.broadcast %cst_23 : f32 to vector<128x16xf32>
    %45 = arith.maximumf %43, %44 : vector<128x16xf32>
    %46 = arith.truncf %45 : vector<128x16xf32> to vector<128x16xbf16>
    %c896 = arith.constant 896 : index
    %c0_24 = arith.constant 0 : index
    %47 = vector.load %arg2[%c896, %c0_24] : memref<1168x128xbf16, #tpu.memory_space<vmem>>, vector<128x128xbf16>
    %cst_25 = arith.constant dense<0.000000e+00> : vector<128x16xf32>
    %48 = tpu.matmul %47, %46, %cst_25 {dimension_numbers = #tpu.dot_dimension_numbers<[1], [0], [0], [1], [0, 0, 1, 1], [], []>} : vector<128x128xbf16>, vector<128x16xbf16>, vector<128x16xf32> -> vector<128x16xf32>
    %c0_26 = arith.constant 0 : index
    %c5 = arith.constant 5 : index
    %49 = vector.load %arg3[%c0_26, %c5] : memref<256x8xf32, #tpu.memory_space<vmem>>, vector<128x1xf32>
    %50 = vector.broadcast %49 : vector<128x1xf32> to vector<128x16xf32>
    %51 = arith.addf %48, %50 : vector<128x16xf32>
    %cst_27 = arith.constant 0.000000e+00 : f32
    %52 = vector.broadcast %cst_27 : f32 to vector<128x16xf32>
    %53 = arith.maximumf %51, %52 : vector<128x16xf32>
    %54 = arith.truncf %53 : vector<128x16xf32> to vector<128x16xbf16>
    %c1024 = arith.constant 1024 : index
    %c0_28 = arith.constant 0 : index
    %55 = vector.load %arg2[%c1024, %c0_28] : memref<1168x128xbf16, #tpu.memory_space<vmem>>, vector<128x128xbf16>
    %cst_29 = arith.constant dense<0.000000e+00> : vector<128x16xf32>
    %56 = tpu.matmul %55, %54, %cst_29 {dimension_numbers = #tpu.dot_dimension_numbers<[1], [0], [0], [1], [0, 0, 1, 1], [], []>} : vector<128x128xbf16>, vector<128x16xbf16>, vector<128x16xf32> -> vector<128x16xf32>
    %c0_30 = arith.constant 0 : index
    %c6 = arith.constant 6 : index
    %57 = vector.load %arg3[%c0_30, %c6] : memref<256x8xf32, #tpu.memory_space<vmem>>, vector<128x1xf32>
    %58 = vector.broadcast %57 : vector<128x1xf32> to vector<128x16xf32>
    %59 = arith.addf %56, %58 : vector<128x16xf32>
    %cst_31 = arith.constant 0.000000e+00 : f32
    %60 = vector.broadcast %cst_31 : f32 to vector<128x16xf32>
    %61 = arith.maximumf %59, %60 : vector<128x16xf32>
    %62 = arith.truncf %61 : vector<128x16xf32> to vector<128x16xbf16>
    %c1152 = arith.constant 1152 : index
    %c0_32 = arith.constant 0 : index
    %63 = vector.load %arg2[%c1152, %c0_32] : memref<1168x128xbf16, #tpu.memory_space<vmem>>, vector<16x128xbf16>
    %cst_33 = arith.constant dense<0.000000e+00> : vector<16x16xf32>
    %64 = tpu.matmul %63, %62, %cst_33 {dimension_numbers = #tpu.dot_dimension_numbers<[1], [0], [0], [1], [0, 0, 1, 1], [], []>} : vector<16x128xbf16>, vector<128x16xbf16>, vector<16x16xf32> -> vector<16x16xf32>
    %c0_34 = arith.constant 0 : index
    %c7 = arith.constant 7 : index
    %65 = vector.load %arg3[%c0_34, %c7] : memref<256x8xf32, #tpu.memory_space<vmem>>, vector<16x1xf32>
    %66 = vector.broadcast %65 : vector<16x1xf32> to vector<16x16xf32>
    %67 = arith.addf %64, %66 : vector<16x16xf32>
    %68 = vector.extract_strided_slice %67 {offsets = [0, 0], sizes = [1, 16], strides = [1, 1]} : vector<16x16xf32> to vector<1x16xf32>
    %69 = arith.negf %68 : vector<1x16xf32>
    %70 = math.exp %69 : vector<1x16xf32>
    %cst_35 = arith.constant 1.000000e+00 : f32
    %71 = vector.broadcast %cst_35 : f32 to vector<1x16xf32>
    %72 = arith.addf %71, %70 : vector<1x16xf32>
    %73 = arith.divf %71, %72 : vector<1x16xf32>
    %c0_36 = arith.constant 0 : index
    %c0_37 = arith.constant 0 : index
    %74 = vector.load %arg4[%c0_36, %c0_37] : memref<1x16xf32, #tpu.memory_space<vmem>>, vector<1x16xf32>
    tpu.vector_store %arg4[%c0_36, %c0_37], %73 {strides = array<i32>} : memref<1x16xf32, #tpu.memory_space<vmem>>, vector<1x16xf32>,
    return
  }
  func.func @transform_0(%arg0: i32) -> (i32, i32) {
    %c0_i32 = arith.constant 0 : i32
    %c0_i32_0 = arith.constant 0 : i32
    return %arg0, %c0_i32 : i32, i32
  }
  func.func @transform_1(%arg0: i32) -> (i32, i32) {
    %c0_i32 = arith.constant 0 : i32
    %c0_i32_0 = arith.constant 0 : i32
    %c0_i32_1 = arith.constant 0 : i32
    return %c0_i32, %c0_i32_0 : i32, i32
  }
  func.func @transform_2(%arg0: i32) -> (i32, i32) {
    %c0_i32 = arith.constant 0 : i32
    %c0_i32_0 = arith.constant 0 : i32
    %c0_i32_1 = arith.constant 0 : i32
    return %c0_i32, %c0_i32_0 : i32, i32
  }
  func.func @transform_3(%arg0: i32) -> (i32, i32) {
    %c0_i32 = arith.constant 0 : i32
    %c0_i32_0 = arith.constant 0 : i32
    return %c0_i32, %arg0 : i32, i32
  }
}

</mosaic_0001>

<bundles_post_ra>
// kernel: tpu_custom_call.1
= control target key start
LH: loop header
LB: loop body
LE: loop exit
PB: predicated region body
PF: predicated region fallthrough
CT: control target
= control target key end

     0   :  { %8 = vsyncpa [#allocation3], 0  ;;  %s3136_s0 = inlined_call_operand.vmem [shape: f32[16,16], index: 0, kind: input, shape index: {}]   ;;  %s3137_s1 = inlined_call_operand.hbm [shape: bf16[1168,128], index: 1, kind: input, shape index: {}]   ;;  %s3138_s2 = inlined_call_operand.vmem [shape: f32[256,8], index: 2, kind: input, shape index: {}]   ;;  %s3139_s3 = inlined_call_operand.hbm [shape: f32[1,16], index: 3, kind: output, shape index: {}]  }
   0x1   :  { %9 = vsyncpa [#allocation4], 0  ;;  %s16_s14 = sshll.u32 %s3137_s1, 4  ;;  %s2544_s15 = smov [#allocation2]   ;;  %s17_s14 = int_to_ptr.hbm [resolvable:$true] %s16_s14 }
   0x2   :  { %s18_s16 = sshll.u32 %s2544_s15, 4  ;;  %s2545_s17 = smov 64   ;;  %s19_s16 = int_to_ptr.vmem [resolvable:$true] %s18_s16 }
   0x3   :  { %s2546_s18 = smov 4  }
   0x4   :  { %24 = dma.hbm_to_vmem [thread:$0]  %s17_s14, 9344, %s19_s16, [#allocation3], %s2545_s17, %s2545_s17, %s2546_s18  }
   0x5   :  { %2540 = dma.done.wait [#allocation3], 9344  }
   0x6   :  { %2541 = vsyncadd [#allocation3], 4294957952  ;;  %v2547_v0 = vmov 0   ;;  %v32_v1 = vld [vmem:[%s3136_s0] sm:$0xff]  ;;  %v33_v2 = vld [vmem:[%s3136_s0 + $0x8] sm:$0xff]  ;;  %vm187_vm0 = vcmask 130048  }
   0x7   :  { %2449 = vset.pattern.permute.xlu0 %v2547_v0  ;;  %2450 = vset.pattern.permute.xlu1 %v2547_v0  ;;  %v2588_v3 = vld [vmem:[%s3138_s2 + $0x70] sm:$0xff]  ;;  %v34_v4 = vpack.c.bf16 %v33_v2, %v32_v1  ;;  %v2594_v5 = vld [vmem:[%s3138_s2 + $0x60] sm:$0xff]  ;;  %v2607_v8 = vld [vmem:[%s3138_s2 + $0x78] sm:$0xff]  ;;  %v2548_v36 = vmov 1   ;;  %s2051_s8 = sshll.u32 %s3139_s3, 4  ;;  %vm2042_vm4 = vcmask 122880   ;;  %s2052_s8 = int_to_ptr.hbm [resolvable:$true] %s2051_s8 }
   0x8   :  { %2451 = vset.pattern.permute.xlu2 %v2547_v0  ;;  %139 = vperm.xlu0 %2449, %v2588_v3   ;;  %v2601_v7 = vld [vmem:[%s3138_s2 + $0x50] sm:$0xff]  ;;  %v2362_v9 = vld [vmem:[#allocation2] sm:$0xff]  ;;  %v2367_v10 = vld [vmem:[#allocation2 + $0x28] sm:$0xff] }
   0x9   :  { %v213_v6 = vsel %vm187_vm0, %v34_v4, 0  ;;  %129 = vperm.xlu1 %2450, %v2594_v5   ;;  %119 = vperm.xlu2 %2451, %v2601_v7   ;;  %v2365_v11 = vld [vmem:[#allocation2 + $0x18] sm:$0xff]  ;;  %v2613_v12 = vld [vmem:[%s3138_s2 + $0x68] sm:$0xff]  ;;  %v2628_v14 = vld [vmem:[%s3138_s2 + $0x40] sm:$0xff] }
   0xa   :  { %222 = vmatpush.bf16.xpose.msra.mxu0 %v213_v6  ;;  %2436 = vmatpush.bf16.xpose.msra.mxu3 %v213_v6  ;;  %v2620_v13 = vld [vmem:[%s3138_s2 + $0x58] sm:$0xff]  ;;  %v2634_v15 = vld [vmem:[%s3138_s2 + $0x48] sm:$0xff]  ;;  %v2639_v16 = vld [vmem:[%s3138_s2 + $0x30] sm:$0xff] }
   0xb   :  { %2435 = vmatpush.bf16.xpose.msra.mxu2 %v213_v6  ;;  %v2646_v17 = vld [vmem:[%s3138_s2 + $0x38] sm:$0xff]  ;;  %v2363_v18 = vld [vmem:[#allocation2 + $0x8] sm:$0xff]  ;;  %v2368_v19 = vld [vmem:[#allocation2 + $0x30] sm:$0xff] }
   0xc   :  { %v2366_v20 = vld [vmem:[#allocation2 + $0x20] sm:$0xff]  ;;  %v2657_v22 = vld [vmem:[%s3138_s2 + $0x28] sm:$0xff]  ;;  %v2667_v23 = vld [vmem:[%s3138_s2 + $0x10] sm:$0xff] }
   0xd   :  { %v2652_v21 = vld [vmem:[%s3138_s2 + $0x20] sm:$0xff]  ;;  %v2673_v24 = vld [vmem:[%s3138_s2 + $0x18] sm:$0xff]  ;;  %v2685_v26 = vld [vmem:[%s3138_s2 + $0x8] sm:$0xff] }
   0xe   :  { %v2678_v25 = vld [vmem:[%s3138_s2] sm:$0xff]  ;;  %v2364_v27 = vld [vmem:[#allocation2 + $0x10] sm:$0xff]  ;;  %v2369_v28 = vld [vmem:[#allocation2 + $0x38] sm:$0xff] }
  0x10   :  { %144 = vperm.xlu0 %2449, %v2607_v8  }
  0x11   :  { %2093 = vmatmul.msk.bf16.vlgmr.msra.gmra.mxu0 %vm187_vm0, %v2362_v9  ;;  %2098 = vmatmul.msk.bf16.vlgmr.msra.gmra.mxu3 %vm187_vm0, %v2367_v10 }
  0x12   :  { %2096 = vmatmul.msk.bf16.vlgmr.msra.gmra.mxu2 %vm187_vm0, %v2365_v11  ;;  %134 = vperm.xlu1 %2450, %v2613_v12  }
  0x13   :  { %124 = vperm.xlu2 %2451, %v2620_v13  }
  0x18   :  { %109 = vperm.xlu0 %2449, %v2628_v14  }
  0x1a   :  { %114 = vperm.xlu1 %2450, %v2634_v15  }
  0x1b   :  { %99 = vperm.xlu2 %2451, %v2639_v16  }
  0x20   :  { %104 = vperm.xlu0 %2449, %v2646_v17  }
  0x21   :  { %2094 = vmatmul.msk.bf16.gmra.mxu0 %vm187_vm0, %v2363_v18  ;;  %2099 = vmatmul.msk.bf16.gmra.mxu3 %vm187_vm0, %v2368_v19 }
  0x22   :  { %2097 = vmatmul.msk.bf16.gmra.mxu2 %vm187_vm0, %v2366_v20  ;;  %89 = vperm.xlu1 %2450, %v2652_v21  }
  0x23   :  { %94 = vperm.xlu2 %2451, %v2657_v22  }
  0x28   :  { %79 = vperm.xlu0 %2449, %v2667_v23  }
  0x2a   :  { %84 = vperm.xlu1 %2450, %v2673_v24  }
  0x2b   :  { %69 = vperm.xlu2 %2451, %v2678_v25  }
  0x30   :  { %74 = vperm.xlu0 %2449, %v2685_v26  }
  0x31   :  { %2095 = vmatmul.msk.bf16.gmra.mxu0 %vm187_vm0, %v2364_v27  ;;  %2100 = vmatmul.msk.bf16.gmra.mxu3 %vm187_vm0, %v2369_v28 }
  0x32   :  { %2452 = vset.pattern.permute.xlu1 %v2548_v36 }
  0x33   :  { %2453 = vset.pattern.permute.xlu2 %v2548_v36  ;;  %361 = vperm.xlu1 %2452, %v2588_v3  }
  0x34   :  { %365 = vperm.xlu2 %2453, %v2607_v8  }
  0x38   :  { %2454 = vset.pattern.permute.xlu0 %v2548_v36 }
  0x39   :  { %353 = vperm.xlu0 %2454, %v2594_v5  }
  0x3b   :  { %357 = vperm.xlu1 %2452, %v2613_v12  }
  0x3c   :  { %345 = vperm.xlu2 %2453, %v2601_v7  }
  0x41   :  { %341 = vperm.xlu0 %2454, %v2634_v15  }
  0x43   :  { %349 = vperm.xlu1 %2452, %v2620_v13  }
  0x44   :  { %337 = vperm.xlu2 %2453, %v2628_v14  }
  0x49   :  { %321 = vperm.xlu0 %2454, %v2652_v21  }
  0x4b   :  { %329 = vperm.xlu1 %2452, %v2639_v16  }
  0x4c   :  { %333 = vperm.xlu2 %2453, %v2646_v17  }
  0x51   :  { %317 = vperm.xlu0 %2454, %v2673_v24  }
  0x53   :  { %325 = vperm.xlu1 %2452, %v2657_v22  }
  0x54   :  { %313 = vperm.xlu2 %2453, %v2667_v23  }
  0x5b   :  { %305 = vperm.xlu1 %2452, %v2678_v25  }
  0x5c   :  { %309 = vperm.xlu2 %2453, %v2685_v26  }
  0x63   :  { %v120_v38 = vpop.permute.xlu2 %119 }
  0x6d   :  { %v125_v44 = vpop.permute.xlu2 %124 }
  0x75   :  { %v100_v52 = vpop.permute.xlu2 %99 }
  0x7a   :  { %v140_v32 = vpop.permute.xlu0 %139 }
  0x7b   :  { %v130_v37 = vpop.permute.xlu1 %129 }
  0x7d   :  { %v95_v18 = vpop.permute.xlu2 %94 }
  0x82   :  { %v145_v39 = vpop.permute.xlu0 %144 }
  0x84   :  { %v135_v43 = vpop.permute.xlu1 %134 }
  0x8a   :  { %v110_v45 = vpop.permute.xlu0 %109 }
  0x8c   :  { %v115_v49 = vpop.permute.xlu1 %114 }
  0x8e   :  { %v2690_v30 = vpop.f32.mrf.mxu0 }
  0x92   :  { %v105_v55 = vpop.permute.xlu0 %104 }
  0x94   :  { %v249_v29 = vpop.f32.mrf.mxu3  ;;  %v90_v2 = vpop.permute.xlu1 %89 }
  0x95   :  { %v239_v34 = vpop.f32.mrf.mxu2  ;;  %v250_v0 = vadd.f32 %v249_v29, %v120_v38 }
  0x96   :  { %v2692_v33 = vpop.f32.mrf.mxu0  ;;  %v240_v19 = vadd.f32 %v239_v34, %v100_v52 }
  0x97   :  { %v274_v11 = vmax.f32 %v250_v0, 0.0 }
  0x9a   :  { %v80_v20 = vpop.permute.xlu0 %79 }
  0x9c   :  { %v251_v31 = vpop.f32.mrf.mxu3 }
  0x9d   :  { %v241_v42 = vpop.f32.mrf.mxu2  ;;  %v252_v60 = vadd.f32 %v251_v31, %v125_v44 }
  0x9e   :  { %v2697_v40 = vpop.f32.mrf.mxu0  ;;  %v242_v27 = vadd.f32 %v241_v42, %v105_v55 }
  0x9f   :  { %v275_v4 = vmax.f32 %v252_v60, 0.0  ;;  %v230_v34 = vadd.f32 %v2697_v40, %v80_v20  ;;  %v2376_v60 = vld [vmem:[#allocation2 + $0x70] sm:$0xff] }
  0xa0   :  { %v271_v36 = vmax.f32 %v242_v27, 0.0 }
  0xa1   :  { %v285_v29 = vpack.c.bf16 %v275_v4, %v274_v11 }
  0xa4   :  { %v254_v35 = vpop.f32.mrf.mxu3 }
  0xa5   :  { %v244_v48 = vpop.f32.mrf.mxu2  ;;  %v255_v56 = vadd.f32 %v254_v35, %v130_v37  ;;  %v270_v35 = vmax.f32 %v240_v19, 0.0 }
  0xa6   :  { %v231_v47 = vpop.f32.mrf.mxu0  ;;  %v245_v6 = vadd.f32 %v244_v48, %v110_v45 }
  0xa7   :  { %v276_v1 = vmax.f32 %v255_v56, 0.0  ;;  %v283_v45 = vpack.c.bf16 %v271_v36, %v270_v35  ;;  %v2549_v36 = vmov 2  }
  0xa8   :  { %v272_v28 = vmax.f32 %v245_v6, 0.0  ;;  %2455 = vset.pattern.permute.xlu0 %v2549_v36  ;;  %2456 = vset.pattern.permute.xlu1 %v2549_v36 }
  0xa9   :  { %562 = vperm.xlu0 %2455, %v2588_v3   ;;  %566 = vperm.xlu1 %2456, %v2607_v8  }
  0xaa   :  { %2457 = vset.pattern.permute.xlu2 %v2549_v36 }
  0xab   :  { %554 = vperm.xlu2 %2457, %v2594_v5  }
  0xac   :  { %v256_v41 = vpop.f32.mrf.mxu3 }
  0xad   :  { %v257_v53 = vadd.f32 %v256_v41, %v135_v43  ;;  %v246_v63 = vpop.f32.mrf.mxu2  ;;  %v70_v43 = vpop.permute.xlu2 %69 }
  0xae   :  { %v234_v59 = vpop.f32.mrf.mxu0  ;;  %v247_v9 = vadd.f32 %v246_v63, %v115_v49  ;;  %v225_v49 = vadd.f32 %v2690_v30, %v70_v43  ;;  %v2374_v30 = vld [vmem:[#allocation2 + $0x60] sm:$0xff] }
  0xaf   :  { %v277_v61 = vmax.f32 %v257_v53, 0.0  ;;  %v235_v41 = vadd.f32 %v234_v59, %v90_v2  ;;  %v2373_v59 = vld [vmem:[#allocation2 + $0x58] sm:$0xff] }
  0xb0   :  { %v273_v31 = vmax.f32 %v247_v9, 0.0  ;;  %v264_v55 = vmax.f32 %v225_v49, 0.0 }
  0xb1   :  { %v286_v10 = vpack.c.bf16 %v277_v61, %v276_v1  ;;  %v268_v48 = vmax.f32 %v235_v41, 0.0  ;;  %v2377_v61 = vld [vmem:[#allocation2 + $0x78] sm:$0xff]  ;;  %550 = vperm.xlu0 %2455, %v2620_v13   ;;  %558 = vperm.xlu1 %2456, %v2613_v12  }
  0xb2   :  { %v284_v38 = vpack.c.bf16 %v273_v31, %v272_v28 }
  0xb3   :  { %546 = vperm.xlu2 %2457, %v2601_v7  }
  0xb4   :  { %v259_v46 = vpop.f32.mrf.mxu3 }
  0xb5   :  { %v260_v50 = vadd.f32 %v259_v46, %v140_v32  ;;  %v75_v46 = vpop.permute.xlu0 %74  ;;  %v366_v20 = vpop.permute.xlu2 %365 }
  0xb6   :  { %v236_v32 = vpop.f32.mrf.mxu0 }
  0xb7   :  { %v278_v57 = vmax.f32 %v260_v50, 0.0  ;;  %v237_v37 = vadd.f32 %v236_v32, %v95_v18  ;;  %v266_v50 = vmax.f32 %v230_v34, 0.0 }
  0xb9   :  { %v269_v44 = vmax.f32 %v237_v37, 0.0  ;;  %530 = vperm.xlu0 %2455, %v2639_v16   ;;  %538 = vperm.xlu1 %2456, %v2628_v14  }
  0xbb   :  { %v282_v53 = vpack.c.bf16 %v269_v44, %v268_v48  ;;  %542 = vperm.xlu2 %2457, %v2634_v15  }
  0xbc   :  { %v261_v51 = vpop.f32.mrf.mxu3 }
  0xbd   :  { %v262_v54 = vadd.f32 %v261_v51, %v145_v39  ;;  %v85_v39 = vpop.permute.xlu1 %84  ;;  %v227_v51 = vadd.f32 %v2692_v33, %v75_v46  ;;  %v2375_v33 = vld [vmem:[#allocation2 + $0x68] sm:$0xff]  ;;  %v346_v31 = vpop.permute.xlu2 %345 }
  0xbe   :  { %v232_v42 = vadd.f32 %v231_v47, %v85_v39  ;;  %v2371_v47 = vld [vmem:[#allocation2 + $0x48] sm:$0xff]  ;;  %v354_v35 = vpop.permute.xlu0 %353 }
  0xbf   :  { %v279_v58 = vmax.f32 %v262_v54, 0.0  ;;  %v265_v54 = vmax.f32 %v227_v51, 0.0 }
  0xc0   :  { %v267_v52 = vmax.f32 %v232_v42, 0.0 }
  0xc1   :  { %v287_v62 = vpack.c.bf16 %v279_v58, %v278_v57  ;;  %v280_v40 = vpack.c.bf16 %v265_v54, %v264_v55  ;;  %v2370_v57 = vld [vmem:[#allocation2 + $0x40] sm:$0xff]  ;;  %v2372_v58 = vld [vmem:[#allocation2 + $0x50] sm:$0xff]  ;;  %526 = vperm.xlu0 %2455, %v2657_v22   ;;  %534 = vperm.xlu1 %2456, %v2646_v17  }
  0xc2   :  { %v281_v56 = vpack.c.bf16 %v267_v52, %v266_v50 }
  0xc3   :  { %416 = vmatpush.bf16.msra.mxu1 %v287_v62  ;;  %522 = vperm.xlu2 %2457, %v2652_v21  }
  0xc5   :  { %v362_v27 = vpop.permute.xlu1 %361  ;;  %v338_v37 = vpop.permute.xlu2 %337 }
  0xc6   :  { %v342_v41 = vpop.permute.xlu0 %341 }
  0xc7   :  { %417 = vmatpush.bf16.msra.mxu1 %v286_v10 }
  0xc9   :  { %506 = vperm.xlu0 %2455, %v2678_v25   ;;  %514 = vperm.xlu1 %2456, %v2667_v23  }
  0xcb   :  { %418 = vmatpush.bf16.msra.mxu1 %v285_v29  ;;  %518 = vperm.xlu2 %2457, %v2673_v24  }
  0xcd   :  { %v358_v29 = vpop.permute.xlu1 %357 }
  0xcf   :  { %419 = vmatpush.bf16.msra.mxu1 %v284_v38 }
  0xd1   :  { %510 = vperm.xlu1 %2456, %v2685_v26  }
  0xd3   :  { %420 = vmatpush.bf16.msra.mxu1 %v283_v45  ;;  %v334_v45 = vpop.permute.xlu2 %333 }
  0xd5   :  { %v350_v39 = vpop.permute.xlu1 %349 }
  0xd7   :  { %421 = vmatpush.bf16.msra.mxu1 %v282_v53 }
  0xdb   :  { %422 = vmatpush.bf16.msra.mxu1 %v281_v56  ;;  %v322_v56 = vpop.permute.xlu0 %321 }
  0xdd   :  { %v330_v50 = vpop.permute.xlu1 %329 }
  0xdf   :  { %423 = vmatpush.bf16.msra.mxu1 %v280_v40 }
  0xe2   :  { %424 = vmatmul.bf16.vlgmr.msra.gmra.mxu1 %v2370_v57 }
  0xf2   :  { %429 = vmatmul.bf16.gmra.mxu1 %v2371_v47 }
 0x102   :  { %434 = vmatmul.bf16.gmra.mxu1 %v2372_v58 }
 0x112   :  { %439 = vmatmul.bf16.gmra.mxu1 %v2373_v59 }
 0x122   :  { %444 = vmatmul.bf16.gmra.mxu1 %v2374_v30  ;;  %v314_v30 = vpop.permute.xlu2 %313 }
 0x132   :  { %449 = vmatmul.bf16.gmra.mxu1 %v2375_v33 }
 0x142   :  { %454 = vmatmul.bf16.gmra.mxu1 %v2376_v60 }
 0x152   :  { %459 = vmatmul.bf16.gmra.mxu1 %v2377_v61 }
 0x15f   :  { %v2715_v62 = vpop.f32.mrf.mxu1 }
 0x167   :  { %v2717_v63 = vpop.f32.mrf.mxu1 }
 0x16f   :  { %v2719_v0 = vpop.f32.mrf.mxu1 }
 0x170   :  { %v431_v36 = vadd.f32 %v2719_v0, %v314_v30 }
 0x177   :  { %v2721_v1 = vpop.f32.mrf.mxu1 }
 0x17f   :  { %v2723_v2 = vpop.f32.mrf.mxu1 }
 0x187   :  { %v2725_v4 = vpop.f32.mrf.mxu1 }
 0x18f   :  { %v440_v6 = vpop.f32.mrf.mxu1 }
 0x197   :  { %v442_v9 = vpop.f32.mrf.mxu1 }
 0x198   :  { %v443_v33 = vadd.f32 %v442_v9, %v334_v45  ;;  %v2379_v45 = vld [vmem:[#allocation2 + $0x88] sm:$0xff] }
 0x19f   :  { %v445_v10 = vpop.f32.mrf.mxu1 }
 0x1a0   :  { %v446_v58 = vadd.f32 %v445_v10, %v338_v37 }
 0x1a7   :  { %v447_v11 = vpop.f32.mrf.mxu1 }
 0x1a8   :  { %v448_v40 = vadd.f32 %v447_v11, %v342_v41  ;;  %v467_v41 = vmax.f32 %v431_v36, 0.0 }
 0x1aa   :  { %v474_v60 = vmax.f32 %v448_v40, 0.0 }
 0x1af   :  { %v450_v18 = vpop.f32.mrf.mxu1 }
 0x1b0   :  { %v451_v54 = vadd.f32 %v450_v18, %v346_v31  ;;  %v326_v18 = vpop.permute.xlu1 %325  ;;  %v436_v31 = vadd.f32 %v2723_v2, %v322_v56 }
 0x1b1   :  { %v438_v11 = vadd.f32 %v2725_v4, %v326_v18  ;;  %v748_v18 = vld [vmem:[%s3138_s2 + $0xd0] sm:$0xff] }
 0x1b2   :  { %v475_v59 = vmax.f32 %v451_v54, 0.0  ;;  %v469_v37 = vmax.f32 %v436_v31, 0.0 }
 0x1b7   :  { %v452_v19 = vpop.f32.mrf.mxu1 }
 0x1b8   :  { %v453_v51 = vadd.f32 %v452_v19, %v350_v39  ;;  %v441_v19 = vadd.f32 %v440_v6, %v330_v50  ;;  %v310_v6 = vpop.permute.xlu2 %309  ;;  %v306_v4 = vpop.permute.xlu1 %305  ;;  %v2385_v50 = vld [vmem:[#allocation2 + $0xb8] sm:$0xff] }
 0x1b9   :  { %v428_v2 = vadd.f32 %v2717_v63, %v310_v6  ;;  %v2381_v63 = vld [vmem:[#allocation2 + $0x98] sm:$0xff] }
 0x1ba   :  { %v476_v57 = vmax.f32 %v453_v51, 0.0  ;;  %v471_v9 = vmax.f32 %v441_v19, 0.0 }
 0x1bc   :  { %v486_v61 = vpack.c.bf16 %v476_v57, %v475_v59  ;;  %v2550_v59 = vmov 3  }
 0x1bd   :  { %2460 = vset.pattern.permute.xlu1 %v2550_v59  ;;  %2458 = vset.pattern.permute.xlu2 %v2550_v59 }
 0x1be   :  { %826 = vperm.xlu2 %2458, %v2588_v3   ;;  %2459 = vset.pattern.permute.xlu0 %v2550_v59 }
 0x1bf   :  { %v455_v28 = vpop.f32.mrf.mxu1  ;;  %831 = vperm.xlu0 %2459, %v2607_v8   ;;  %v753_v8 = vld [vmem:[%s3138_s2 + $0xf8] sm:$0xff] }
 0x1c0   :  { %v456_v46 = vadd.f32 %v455_v28, %v354_v35  ;;  %v318_v28 = vpop.permute.xlu0 %317  ;;  %v567_v19 = vpop.permute.xlu1 %566 }
 0x1c2   :  { %v477_v55 = vmax.f32 %v456_v46, 0.0  ;;  %v2380_v46 = vld [vmem:[#allocation2 + $0x90] sm:$0xff] }
 0x1c6   :  { %911 = vperm.xlu2 %2458, %v753_v8  }
 0x1c7   :  { %v457_v32 = vpop.f32.mrf.mxu1 }
 0x1c8   :  { %v458_v42 = vadd.f32 %v457_v32, %v358_v29  ;;  %v433_v29 = vadd.f32 %v2721_v1, %v318_v28  ;;  %v470_v32 = vmax.f32 %v438_v11, 0.0  ;;  %v426_v1 = vadd.f32 %v2715_v62, %v306_v4  ;;  %v2383_v62 = vld [vmem:[#allocation2 + $0xa8] sm:$0xff]  ;;  %v563_v11 = vpop.permute.xlu0 %562 }
 0x1ca   :  { %v478_v52 = vmax.f32 %v458_v42, 0.0  ;;  %v483_v39 = vpack.c.bf16 %v470_v32, %v469_v37  ;;  %v465_v42 = vmax.f32 %v426_v1, 0.0 }
 0x1cc   :  { %v487_v47 = vpack.c.bf16 %v478_v52, %v477_v55 }
 0x1ce   :  { %821 = vperm.xlu2 %2458, %v2613_v12  }
 0x1cf   :  { %v460_v38 = vpop.f32.mrf.mxu1 }
 0x1d0   :  { %v461_v34 = vadd.f32 %v460_v38, %v362_v27  ;;  %v472_v27 = vmax.f32 %v443_v33, 0.0  ;;  %v468_v38 = vmax.f32 %v433_v29, 0.0  ;;  %v551_v29 = vpop.permute.xlu0 %550 }
 0x1d2   :  { %v479_v48 = vmax.f32 %v461_v34, 0.0  ;;  %v484_v35 = vpack.c.bf16 %v472_v27, %v471_v9  ;;  %v466_v34 = vmax.f32 %v428_v2, 0.0 }
 0x1d4   :  { %v481_v0 = vpack.c.bf16 %v466_v34, %v465_v42 }
 0x1d6   :  { %806 = vperm.xlu2 %2458, %v2601_v7   ;;  %v742_v7 = vld [vmem:[%s3138_s2 + $0xa0] sm:$0xff] }
 0x1d7   :  { %v462_v43 = vpop.f32.mrf.mxu1 }
 0x1d8   :  { %v463_v44 = vadd.f32 %v462_v43, %v366_v20  ;;  %v473_v20 = vmax.f32 %v446_v58, 0.0  ;;  %v482_v43 = vpack.c.bf16 %v468_v38, %v467_v41  ;;  %v752_v58 = vld [vmem:[%s3138_s2 + $0xf0] sm:$0xff]  ;;  %v531_v38 = vpop.permute.xlu0 %530 }
 0x1d9   :  { %906 = vperm.xlu1 %2460, %v752_v58   ;;  %v746_v58 = vld [vmem:[%s3138_s2 + $0xc0] sm:$0xff] }
 0x1da   :  { %v480_v49 = vmax.f32 %v463_v44, 0.0  ;;  %v485_v10 = vpack.c.bf16 %v474_v60, %v473_v20  ;;  %v2378_v44 = vld [vmem:[#allocation2 + $0x80] sm:$0xff]  ;;  %v751_v60 = vld [vmem:[%s3138_s2 + $0xe8] sm:$0xff]  ;;  %v555_v20 = vpop.permute.xlu2 %554 }
 0x1dc   :  { %v488_v53 = vpack.c.bf16 %v480_v49, %v479_v48  ;;  %v2382_v48 = vld [vmem:[#allocation2 + $0xa0] sm:$0xff]  ;;  %v2384_v49 = vld [vmem:[#allocation2 + $0xb0] sm:$0xff] }
 0x1de   :  { %617 = vmatpush.bf16.msrb.mxu2 %v488_v53 }
 0x1e0   :  { %v527_v59 = vpop.permute.xlu0 %526 }
 0x1e1   :  { %816 = vperm.xlu1 %2460, %v2594_v5   ;;  %v559_v5 = vpop.permute.xlu1 %558 }
 0x1e2   :  { %618 = vmatpush.bf16.msrb.mxu2 %v487_v47  ;;  %v547_v28 = vpop.permute.xlu2 %546 }
 0x1e6   :  { %619 = vmatpush.bf16.msrb.mxu2 %v486_v61 }
 0x1e9   :  { %901 = vperm.xlu1 %2460, %v751_v60   ;;  %v539_v31 = vpop.permute.xlu1 %538 }
 0x1ea   :  { %620 = vmatpush.bf16.msrb.mxu2 %v485_v10  ;;  %v750_v10 = vld [vmem:[%s3138_s2 + $0xe0] sm:$0xff]  ;;  %v543_v32 = vpop.permute.xlu2 %542 }
 0x1eb   :  { %896 = vperm.xlu0 %2459, %v750_v10  }
 0x1ee   :  { %621 = vmatpush.bf16.msrb.mxu2 %v484_v35 }
 0x1f1   :  { %886 = vperm.xlu1 %2460, %v748_v18   ;;  %v535_v12 = vpop.permute.xlu1 %534 }
 0x1f2   :  { %622 = vmatpush.bf16.msrb.mxu2 %v483_v39  ;;  %v523_v42 = vpop.permute.xlu2 %522 }
 0x1f3   :  { %811 = vperm.xlu0 %2459, %v2620_v13   ;;  %v749_v13 = vld [vmem:[%s3138_s2 + $0xd8] sm:$0xff] }
 0x1f4   :  { %891 = vperm.xlu2 %2458, %v749_v13  }
 0x1f6   :  { %623 = vmatpush.bf16.msrb.mxu2 %v482_v43 }
 0x1f9   :  { %801 = vperm.xlu1 %2460, %v2634_v15   ;;  %v745_v15 = vld [vmem:[%s3138_s2 + $0xb8] sm:$0xff] }
 0x1fa   :  { %624 = vmatpush.bf16.msrb.mxu2 %v481_v0  ;;  %v519_v18 = vpop.permute.xlu2 %518 }
 0x1fb   :  { %796 = vperm.xlu0 %2459, %v2628_v14  }
 0x1fc   :  { %876 = vperm.xlu2 %2458, %v746_v58  }
 0x1fd   :  { %625 = vmatmul.bf16.vlgmr.msrb.gmra.mxu2 %v2378_v44 }
 0x201   :  { %786 = vperm.xlu1 %2460, %v2639_v16  }
 0x204   :  { %791 = vperm.xlu2 %2458, %v2646_v17   ;;  %v743_v17 = vld [vmem:[%s3138_s2 + $0xa8] sm:$0xff] }
 0x209   :  { %871 = vperm.xlu1 %2460, %v745_v15  }
 0x20c   :  { %776 = vperm.xlu2 %2458, %v2652_v21   ;;  %v2388_v21 = vld [vmem:[#allocation2 + $0xd0] sm:$0xff] }
 0x20d   :  { %630 = vmatmul.bf16.gmra.mxu2 %v2379_v45  ;;  %v747_v45 = vld [vmem:[%s3138_s2 + $0xc8] sm:$0xff] }
 0x20e   :  { %881 = vperm.xlu0 %2459, %v747_v45  }
 0x211   :  { %856 = vperm.xlu1 %2460, %v742_v7   ;;  %v2392_v7 = vld [vmem:[#allocation2 + $0xf0] sm:$0xff] }
 0x214   :  { %861 = vperm.xlu2 %2458, %v743_v17  }
 0x219   :  { %771 = vperm.xlu1 %2460, %v2673_v24  }
 0x21d   :  { %635 = vmatmul.bf16.gmra.mxu2 %v2380_v46 }
 0x221   :  { %756 = vperm.xlu1 %2460, %v2678_v25   ;;  %v2386_v25 = vld [vmem:[#allocation2 + $0xc0] sm:$0xff] }
 0x22d   :  { %640 = vmatmul.bf16.gmra.mxu2 %v2381_v63 }
 0x23d   :  { %645 = vmatmul.bf16.gmra.mxu2 %v2382_v48  ;;  %v515_v48 = vpop.permute.xlu1 %514 }
 0x24d   :  { %650 = vmatmul.bf16.gmra.mxu2 %v2383_v62 }
 0x25d   :  { %655 = vmatmul.bf16.gmra.mxu2 %v2384_v49 }
 0x26d   :  { %660 = vmatmul.bf16.gmra.mxu2 %v2385_v50 }
 0x280   :  { %v2749_v51 = vpop.f32.mrf.mxu2 }
 0x288   :  { %v2751_v52 = vpop.f32.mrf.mxu2 }
 0x290   :  { %v2753_v53 = vpop.f32.mrf.mxu2 }
 0x291   :  { %v632_v24 = vadd.f32 %v2753_v53, %v515_v48 }
 0x298   :  { %v2755_v54 = vpop.f32.mrf.mxu2 }
 0x2a0   :  { %v2757_v55 = vpop.f32.mrf.mxu2 }
 0x2a8   :  { %v2759_v56 = vpop.f32.mrf.mxu2 }
 0x2b0   :  { %v2761_v40 = vpop.f32.mrf.mxu2 }
 0x2b8   :  { %v2763_v57 = vpop.f32.mrf.mxu2 }
 0x2b9   :  { %v644_v62 = vadd.f32 %v2763_v57, %v535_v12  ;;  %v637_v57 = vadd.f32 %v2757_v55, %v523_v42  ;;  %v741_v42 = vld [vmem:[%s3138_s2 + $0x98] sm:$0xff] }
 0x2bb   :  { %v673_v60 = vmax.f32 %v644_v62, 0.0  ;;  %v739_v62 = vld [vmem:[%s3138_s2 + $0x88] sm:$0xff] }
 0x2bc   :  { %841 = vperm.xlu1 %2460, %v739_v62  }
 0x2c0   :  { %v2765_v47 = vpop.f32.mrf.mxu2 }
 0x2c1   :  { %v647_v46 = vadd.f32 %v2765_v47, %v539_v31  ;;  %v639_v47 = vadd.f32 %v2759_v56, %v527_v59  ;;  %v507_v56 = vpop.permute.xlu0 %506 }
 0x2c2   :  { %v627_v10 = vadd.f32 %v2749_v51, %v507_v56  ;;  %v740_v51 = vld [vmem:[%s3138_s2 + $0x90] sm:$0xff] }
 0x2c3   :  { %846 = vperm.xlu2 %2458, %v740_v51  }
 0x2c8   :  { %v648_v30 = vpop.f32.mrf.mxu2 }
 0x2c9   :  { %v649_v0 = vadd.f32 %v648_v30, %v543_v32  ;;  %v642_v30 = vadd.f32 %v2761_v40, %v531_v38  ;;  %v744_v40 = vld [vmem:[%s3138_s2 + $0xb0] sm:$0xff]  ;;  %v2389_v32 = vld [vmem:[#allocation2 + $0xd8] sm:$0xff] }
 0x2ca   :  { %866 = vperm.xlu0 %2459, %v744_v40  }
 0x2cb   :  { %v675_v49 = vmax.f32 %v649_v0, 0.0  ;;  %761 = vperm.xlu2 %2458, %v2685_v26  }
 0x2d0   :  { %v651_v33 = vpop.f32.mrf.mxu2 }
 0x2d1   :  { %v652_v34 = vadd.f32 %v651_v33, %v547_v28  ;;  %v674_v33 = vmax.f32 %v647_v46, 0.0  ;;  %v668_v28 = vmax.f32 %v632_v24, 0.0  ;;  %v738_v46 = vld [vmem:[%s3138_s2 + $0x80] sm:$0xff] }
 0x2d2   :  { %781 = vperm.xlu0 %2459, %v2657_v22   ;;  %v2831_v22 = vpop.permute.xlu2 %826 }
 0x2d3   :  { %v676_v63 = vmax.f32 %v652_v34, 0.0 }
 0x2d8   :  { %v653_v61 = vpop.f32.mrf.mxu2 }
 0x2d9   :  { %v654_v39 = vadd.f32 %v653_v61, %v551_v29  ;;  %v686_v61 = vpack.c.bf16 %v675_v49, %v674_v33  ;;  %v666_v29 = vmax.f32 %v627_v10, 0.0 }
 0x2da   :  { %766 = vperm.xlu0 %2459, %v2667_v23  }
 0x2db   :  { %v677_v44 = vmax.f32 %v654_v39, 0.0 }
 0x2dd   :  { %v687_v50 = vpack.c.bf16 %v677_v44, %v676_v63 }
 0x2e0   :  { %v656_v3 = vpop.f32.mrf.mxu2 }
 0x2e1   :  { %v657_v4 = vadd.f32 %v656_v3, %v555_v20  ;;  %v634_v3 = vadd.f32 %v2755_v54, %v519_v18  ;;  %v671_v20 = vmax.f32 %v639_v47, 0.0 }
 0x2e2   :  { %851 = vperm.xlu0 %2459, %v741_v42  }
 0x2e3   :  { %v678_v43 = vmax.f32 %v657_v4, 0.0  ;;  %v669_v54 = vmax.f32 %v634_v3, 0.0  ;;  %v2391_v4 = vld [vmem:[#allocation2 + $0xe8] sm:$0xff] }
 0x2e4   :  { %v2395_v3 = vld [vmem:[#allocation2 + $0x108] sm:$0xff] }
 0x2e8   :  { %v658_v27 = vpop.f32.mrf.mxu2 }
 0x2e9   :  { %v659_v36 = vadd.f32 %v658_v27, %v559_v5  ;;  %v511_v5 = vpop.permute.xlu1 %510 }
 0x2ea   :  { %v629_v55 = vadd.f32 %v2751_v52, %v511_v5  ;;  %v2387_v52 = vld [vmem:[#allocation2 + $0xc8] sm:$0xff]  ;;  %836 = vperm.xlu0 %2459, %v738_v46  }
 0x2eb   :  { %v679_v1 = vmax.f32 %v659_v36, 0.0  ;;  %v2390_v36 = vld [vmem:[#allocation2 + $0xe0] sm:$0xff] }
 0x2ec   :  { %v667_v31 = vmax.f32 %v629_v55, 0.0 }
 0x2ed   :  { %v688_v14 = vpack.c.bf16 %v679_v1, %v678_v43 }
 0x2ee   :  { %v682_v53 = vpack.c.bf16 %v667_v31, %v666_v29  ;;  %v2396_v31 = vld [vmem:[#allocation2 + $0x110] sm:$0xff] }
 0x2f0   :  { %v661_v9 = vpop.f32.mrf.mxu2 }
 0x2f1   :  { %v662_v35 = vadd.f32 %v661_v9, %v563_v11  ;;  %v670_v11 = vmax.f32 %v637_v57, 0.0  ;;  %v683_v9 = vpack.c.bf16 %v669_v54, %v668_v28  ;;  %v2833_v15 = vpop.permute.xlu1 %906 }
 0x2f3   :  { %v680_v16 = vmax.f32 %v662_v35, 0.0  ;;  %v684_v27 = vpack.c.bf16 %v671_v20, %v670_v11  ;;  %v2835_v35 = vpop.permute.xlu2 %911 }
 0x2f8   :  { %v663_v6 = vpop.f32.mrf.mxu2 }
 0x2f9   :  { %v664_v37 = vadd.f32 %v663_v6, %v567_v19  ;;  %v672_v19 = vmax.f32 %v642_v30, 0.0  ;;  %v2837_v23 = vpop.permute.xlu1 %816 }
 0x2fb   :  { %v681_v2 = vmax.f32 %v664_v37, 0.0  ;;  %v685_v8 = vpack.c.bf16 %v673_v60, %v672_v19  ;;  %v2839_v6 = vpop.permute.xlu2 %821 }
 0x2fd   :  { %v689_v41 = vpack.c.bf16 %v681_v2, %v680_v16  ;;  %v2847_v16 = vpop.permute.xlu0 %831 }
 0x2ff   :  { %1010 = vmatpush.bf16.msrb.mxu3 %v689_v41 }
 0x301   :  { %v2841_v37 = vpop.permute.xlu1 %901 }
 0x303   :  { %1011 = vmatpush.bf16.msrb.mxu3 %v688_v14  ;;  %v2843_v12 = vpop.permute.xlu2 %806  ;;  %v2393_v14 = vld [vmem:[#allocation2 + $0xf8] sm:$0xff] }
 0x305   :  { %v2853_v39 = vpop.permute.xlu0 %896 }
 0x307   :  { %1012 = vmatpush.bf16.msrb.mxu3 %v687_v50  ;;  %v2394_v50 = vld [vmem:[#allocation2 + $0x100] sm:$0xff] }
 0x309   :  { %v2845_v26 = vpop.permute.xlu1 %886 }
 0x30b   :  { %1013 = vmatpush.bf16.msrb.mxu3 %v686_v61  ;;  %v2849_v2 = vpop.permute.xlu2 %891 }
 0x30d   :  { %v2859_v13 = vpop.permute.xlu0 %811 }
 0x30f   :  { %1014 = vmatpush.bf16.msrb.mxu3 %v685_v8 }
 0x311   :  { %v2851_v38 = vpop.permute.xlu1 %801 }
 0x313   :  { %1015 = vmatpush.bf16.msrb.mxu3 %v684_v27  ;;  %v2855_v1 = vpop.permute.xlu2 %876 }
 0x315   :  { %v2868_v0 = vpop.permute.xlu0 %796 }
 0x317   :  { %1016 = vmatpush.bf16.msrb.mxu3 %v683_v9 }
 0x319   :  { %v2857_v41 = vpop.permute.xlu1 %786 }
 0x31b   :  { %1017 = vmatpush.bf16.msrb.mxu3 %v682_v53  ;;  %v2861_v34 = vpop.permute.xlu2 %791 }
 0x31d   :  { %v2875_v63 = vpop.permute.xlu0 %881 }
 0x31e   :  { %1018 = vmatmul.bf16.vlgmr.msrb.gmra.mxu3 %v2386_v25 }
 0x321   :  { %v2863_v43 = vpop.permute.xlu1 %871 }
 0x323   :  { %v777_v44 = vpop.permute.xlu2 %776 }
 0x329   :  { %v2870_v45 = vpop.permute.xlu1 %856 }
 0x32b   :  { %v2877_v48 = vpop.permute.xlu2 %861 }
 0x32e   :  { %1023 = vmatmul.bf16.gmra.mxu3 %v2387_v52 }
 0x331   :  { %v772_v49 = vpop.permute.xlu1 %771 }
 0x333   :  { %v2884_v59 = vpop.permute.xlu2 %846 }
 0x339   :  { %v757_v30 = vpop.permute.xlu1 %756 }
 0x33b   :  { %v762_v61 = vpop.permute.xlu2 %761 }
 0x33c   :  { %v2882_v58 = vpop.permute.xlu0 %866 }
 0x33e   :  { %1028 = vmatmul.bf16.gmra.mxu3 %v2388_v21 }
 0x344   :  { %v782_v60 = vpop.permute.xlu0 %781 }
 0x34c   :  { %v767_v11 = vpop.permute.xlu0 %766 }
 0x34e   :  { %1033 = vmatmul.bf16.gmra.mxu3 %v2389_v32 }
 0x35e   :  { %1038 = vmatmul.bf16.gmra.mxu3 %v2390_v36 }
 0x36e   :  { %1043 = vmatmul.bf16.gmra.mxu3 %v2391_v4 }
 0x37e   :  { %1048 = vmatmul.bf16.gmra.mxu3 %v2392_v7  ;;  %v2397_v7 = vld [vmem:[#allocation2 + $0x118] sm:$0xff] }
 0x38e   :  { %1053 = vmatmul.bf16.gmra.mxu3 %v2393_v14 }
 0x39e   :  { %1058 = vmatmul.bf16.gmra.mxu3 %v2394_v50 }
 0x3a1   :  { %v1019_v33 = vpop.f32.mrf.mxu3 }
 0x3a2   :  { %v1020_v47 = vadd.f32 %v1019_v33, %v757_v30 }
 0x3a4   :  { %v1099_v18 = vmax.f32 %v1020_v47, 0.0 }
 0x3a6   :  { %v1131_v20 = vpack.c.bf16 %v1099_v18, %v1099_v18 }
 0x3a8   :  { %v1404_v40 = vunpack.c.l.b16 %v1131_v20 }
 0x3a9   :  { %v1021_v57 = vpop.f32.mrf.mxu3 }
 0x3aa   :  { %v1022_v19 = vadd.f32 %v1021_v57, %v762_v61 }
 0x3ac   :  { %v1100_v8 = vmax.f32 %v1022_v19, 0.0 }
 0x3ae   :  { %v1132_v5 = vpack.c.bf16 %v1100_v8, %v1100_v8  ;;  %1063 = vmatmul.bf16.gmra.mxu3 %v2395_v3 }
 0x3b0   :  { %v1405_v24 = vunpack.c.l.b16 %v1132_v5 }
 0x3b1   :  { %v1024_v56 = vpop.f32.mrf.mxu3 }
 0x3b2   :  { %v2886_v55 = vpack.c.b16 %v1405_v24, %v1404_v40  ;;  %v1025_v54 = vadd.f32 %v1024_v56, %v767_v11  ;;  %v2399_v24 = vld [vmem:[#allocation2 + $0x128] sm:$0xff] }
 0x3b4   :  { %v1101_v27 = vmax.f32 %v1025_v54, 0.0 }
 0x3b6   :  { %v1133_v9 = vpack.c.bf16 %v1101_v27, %v1101_v27 }
 0x3b8   :  { %v1406_v25 = vunpack.c.l.b16 %v1133_v9  ;;  %v852_v9 = vpop.permute.xlu0 %851 }
 0x3b9   :  { %v1026_v10 = vpop.f32.mrf.mxu3 }
 0x3ba   :  { %v1027_v28 = vadd.f32 %v1026_v10, %v772_v49 }
 0x3bc   :  { %v1102_v29 = vmax.f32 %v1027_v28, 0.0 }
 0x3be   :  { %v1134_v53 = vpack.c.bf16 %v1102_v29, %v1102_v29  ;;  %1068 = vmatmul.bf16.gmra.mxu3 %v2396_v31 }
 0x3c0   :  { %v1407_v17 = vunpack.c.l.b16 %v1134_v53 }
 0x3c1   :  { %v1029_v51 = vpop.f32.mrf.mxu3 }
 0x3c2   :  { %v2888_v52 = vpack.c.b16 %v1407_v17, %v1406_v25  ;;  %v1030_v21 = vadd.f32 %v1029_v51, %v777_v44  ;;  %v2398_v44 = vld [vmem:[#allocation2 + $0x120] sm:$0xff] }
 0x3c4   :  { %v1103_v32 = vmax.f32 %v1030_v21, 0.0 }
 0x3c6   :  { %v1135_v42 = vpack.c.bf16 %v1103_v32, %v1103_v32 }
 0x3c8   :  { %v1408_v62 = vunpack.c.l.b16 %v1135_v42 }
 0x3c9   :  { %v1031_v36 = vpop.f32.mrf.mxu3 }
 0x3ca   :  { %v1032_v4 = vadd.f32 %v1031_v36, %v782_v60 }
 0x3cc   :  { %v1104_v14 = vmax.f32 %v1032_v4, 0.0 }
 0x3ce   :  { %v1136_v46 = vpack.c.bf16 %v1104_v14, %v1104_v14  ;;  %1073 = vmatmul.bf16.gmra.mxu3 %v2397_v7 }
 0x3d0   :  { %v1409_v49 = vunpack.c.l.b16 %v1136_v46 }
 0x3d1   :  { %v1034_v50 = vpop.f32.mrf.mxu3 }
 0x3d2   :  { %v2890_v30 = vpack.c.b16 %v1409_v49, %v1408_v62  ;;  %v1035_v33 = vadd.f32 %v1034_v50, %v2857_v41  ;;  %v2400_v41 = vld [vmem:[#allocation2 + $0x130] sm:$0xff] }
 0x3d4   :  { %v1105_v47 = vmax.f32 %v1035_v33, 0.0 }
 0x3d6   :  { %v1137_v57 = vpack.c.bf16 %v1105_v47, %v1105_v47 }
 0x3d8   :  { %v1410_v3 = vunpack.c.l.b16 %v1137_v57 }
 0x3d9   :  { %v1036_v61 = vpop.f32.mrf.mxu3 }
 0x3da   :  { %v1037_v18 = vadd.f32 %v1036_v61, %v2861_v34  ;;  %v2401_v34 = vld [vmem:[#allocation2 + $0x138] sm:$0xff] }
 0x3dc   :  { %v1106_v19 = vmax.f32 %v1037_v18, 0.0 }
 0x3de   :  { %v1138_v60 = vpack.c.bf16 %v1106_v19, %v1106_v19  ;;  %1078 = vmatmul.bf16.gmra.mxu3 %v2398_v44 }
 0x3e0   :  { %v1411_v20 = vunpack.c.l.b16 %v1138_v60 }
 0x3e1   :  { %v1039_v8 = vpop.f32.mrf.mxu3 }
 0x3e2   :  { %v2894_v5 = vpack.c.b16 %v1411_v20, %v1410_v3  ;;  %v1040_v46 = vadd.f32 %v1039_v8, %v2868_v0  ;;  %v842_v20 = vpop.permute.xlu1 %841 }
 0x3e4   :  { %v1107_v18 = vmax.f32 %v1040_v46, 0.0 }
 0x3e6   :  { %v1139_v0 = vpack.c.bf16 %v1107_v18, %v1107_v18 }
 0x3e9   :  { %v1041_v40 = vpop.f32.mrf.mxu3 }
 0x3ea   :  { %v1042_v42 = vadd.f32 %v1041_v40, %v2851_v38 }
 0x3ec   :  { %v1108_v47 = vmax.f32 %v1042_v42, 0.0 }
 0x3ee   :  { %1083 = vmatmul.bf16.gmra.mxu3 %v2399_v24  ;;  %v1140_v38 = vpack.c.bf16 %v1108_v47, %v1108_v47 }
 0x3f1   :  { %v1044_v11 = vpop.f32.mrf.mxu3 }
 0x3f2   :  { %v1045_v32 = vadd.f32 %v1044_v11, %v2843_v12  ;;  %v1413_v11 = vunpack.c.l.b16 %v1140_v38 }
 0x3f9   :  { %v1046_v56 = vpop.f32.mrf.mxu3 }
 0x3fa   :  { %v1047_v17 = vadd.f32 %v1046_v56, %v2859_v13  ;;  %v837_v13 = vpop.permute.xlu0 %836 }
 0x3fe   :  { %1088 = vmatmul.bf16.gmra.mxu3 %v2400_v41 }
 0x401   :  { %v1049_v54 = vpop.f32.mrf.mxu3 }
 0x402   :  { %v1050_v29 = vadd.f32 %v1049_v54, %v2837_v23  ;;  %v1109_v23 = vmax.f32 %v1045_v32, 0.0  ;;  %v1412_v54 = vunpack.c.l.b16 %v1139_v0 }
 0x404   :  { %v1111_v36 = vmax.f32 %v1050_v29, 0.0  ;;  %v1141_v44 = vpack.c.bf16 %v1109_v23, %v1109_v23 }
 0x406   :  { %v1143_v62 = vpack.c.bf16 %v1111_v36, %v1111_v36  ;;  %v1414_v8 = vunpack.c.l.b16 %v1141_v44 }
 0x408   :  { %v1416_v57 = vunpack.c.l.b16 %v1143_v62 }
 0x409   :  { %v1051_v27 = vpop.f32.mrf.mxu3 }
 0x40a   :  { %v1052_v31 = vadd.f32 %v1051_v27, %v2839_v6 }
 0x40c   :  { %v1112_v51 = vmax.f32 %v1052_v31, 0.0 }
 0x40e   :  { %1093 = vmatmul.bf16.gmra.mxu3 %v2401_v34  ;;  %v1144_v14 = vpack.c.bf16 %v1112_v51, %v1112_v51 }
 0x410   :  { %v1417_v61 = vunpack.c.l.b16 %v1144_v14 }
 0x411   :  { %v1054_v10 = vpop.f32.mrf.mxu3 }
 0x412   :  { %v1055_v28 = vadd.f32 %v1054_v10, %v2831_v22  ;;  %v1110_v22 = vmax.f32 %v1047_v17, 0.0  ;;  %v1426_v3 = vpack.c.b16 %v1417_v61, %v1416_v57 }
 0x414   :  { %v1113_v53 = vmax.f32 %v1055_v28, 0.0  ;;  %v1424_v28 = vpack.c.b16 %v1413_v11, %v1412_v54 }
 0x416   :  { %v1145_v4 = vpack.c.bf16 %v1113_v53, %v1113_v53 }
 0x418   :  { %v1418_v49 = vunpack.c.l.b16 %v1145_v4 }
 0x419   :  { %v1056_v25 = vpop.f32.mrf.mxu3 }
 0x41a   :  { %v1057_v21 = vadd.f32 %v1056_v25, %v2847_v16  ;;  %v1142_v16 = vpack.c.bf16 %v1110_v22, %v1110_v22 }
 0x41c   :  { %v1114_v7 = vmax.f32 %v1057_v21, 0.0  ;;  %v1415_v60 = vunpack.c.l.b16 %v1142_v16 }
 0x41e   :  { %v1146_v6 = vpack.c.bf16 %v1114_v7, %v1114_v7  ;;  %v1425_v41 = vpack.c.b16 %v1415_v60, %v1414_v8  ;;  %v2551_v8 = vmov 4  }
 0x41f   :  { %2462 = vset.pattern.permute.xlu0 %v2551_v8  ;;  %2461 = vset.pattern.permute.xlu2 %v2551_v8 }
 0x420   :  { %v1419_v50 = vunpack.c.l.b16 %v1146_v6  ;;  %2463 = vset.pattern.permute.xlu1 %v2551_v8  ;;  %v2408_v8 = vld [vmem:[#allocation2 + $0x170] sm:$0xff] }
 0x421   :  { %v1059_v33 = vpop.f32.mrf.mxu3 }
 0x422   :  { %v1427_v12 = vpack.c.b16 %v1419_v50, %v1418_v49  ;;  %v1060_v19 = vadd.f32 %v1059_v33, %v837_v13 }
 0x424   :  { %1436 = vmatpush.bf16.msrb.mxu1 %v1427_v12  ;;  %v1115_v40 = vmax.f32 %v1060_v19, 0.0 }
 0x426   :  { %v1147_v27 = vpack.c.bf16 %v1115_v40, %v1115_v40  ;;  %v2926_v40 = vld [vmem:[%s3138_s2 + $0x78] sm:$0xff] }
 0x427   :  { %1546 = vperm.xlu0 %2462, %v2926_v40  }
 0x428   :  { %1437 = vmatpush.bf16.msrb.mxu1 %v1426_v3  ;;  %v1259_v31 = vunpack.c.l.b16 %v1147_v27 }
 0x429   :  { %v1061_v24 = vpop.f32.mrf.mxu3 }
 0x42a   :  { %v1062_v56 = vadd.f32 %v1061_v24, %v842_v20  ;;  %v2932_v24 = vld [vmem:[%s3138_s2 + $0x70] sm:$0xff] }
 0x42b   :  { %1542 = vperm.xlu2 %2461, %v2932_v24  }
 0x42c   :  { %v1116_v34 = vmax.f32 %v1062_v56, 0.0  ;;  %1438 = vmatpush.bf16.msrb.mxu1 %v1425_v41  ;;  %v2402_v56 = vld [vmem:[#allocation2 + $0x140] sm:$0xff] }
 0x42e   :  { %v1148_v10 = vpack.c.bf16 %v1116_v34, %v1116_v34 }
 0x430   :  { %v1260_v29 = vunpack.c.l.b16 %v1148_v10  ;;  %1439 = vmatpush.bf16.msrb.mxu1 %v1424_v28 }
 0x431   :  { %v1064_v53 = vpop.f32.mrf.mxu3 }
 0x432   :  { %v2904_v25 = vpack.c.b16 %v1260_v29, %v1259_v31  ;;  %v1065_v17 = vadd.f32 %v1064_v53, %v2884_v59 }
 0x434   :  { %1440 = vmatpush.bf16.msrb.mxu1 %v2894_v5  ;;  %v1117_v51 = vmax.f32 %v1065_v17, 0.0 }
 0x436   :  { %v1149_v36 = vpack.c.bf16 %v1117_v51, %v1117_v51 }
 0x438   :  { %1441 = vmatpush.bf16.msrb.mxu1 %v2890_v30  ;;  %v1261_v42 = vunpack.c.l.b16 %v1149_v36 }
 0x439   :  { %v1066_v21 = vpop.f32.mrf.mxu3 }
 0x43a   :  { %v1067_v32 = vadd.f32 %v1066_v21, %v852_v9  ;;  %v2949_v21 = vld [vmem:[%s3138_s2 + $0x40] sm:$0xff] }
 0x43b   :  { %1518 = vperm.xlu0 %2462, %v2949_v21  }
 0x43c   :  { %v1118_v4 = vmax.f32 %v1067_v32, 0.0  ;;  %1442 = vmatpush.bf16.msrb.mxu1 %v2888_v52 }
 0x43e   :  { %v1150_v7 = vpack.c.bf16 %v1118_v4, %v1118_v4  ;;  %v2962_v4 = vld [vmem:[%s3138_s2 + $0x50] sm:$0xff] }
 0x440   :  { %v1262_v22 = vunpack.c.l.b16 %v1150_v7  ;;  %1443 = vmatpush.bf16.msrb.mxu1 %v2886_v55 }
 0x441   :  { %v1069_v14 = vpop.f32.mrf.mxu3 }
 0x442   :  { %v2911_v6 = vpack.c.b16 %v1262_v22, %v1261_v42  ;;  %v1070_v59 = vadd.f32 %v1069_v14, %v2870_v45 }
 0x443   :  { %1444 = vmatmul.bf16.vlgmr.msrb.gmra.mxu1 %v2402_v56 }
 0x444   :  { %v1119_v5 = vmax.f32 %v1070_v59, 0.0 }
 0x446   :  { %v1151_v23 = vpack.c.bf16 %v1119_v5, %v1119_v5 }
 0x448   :  { %v1263_v49 = vunpack.c.l.b16 %v1151_v23 }
 0x449   :  { %v1071_v46 = vpop.f32.mrf.mxu3 }
 0x44a   :  { %v1072_v30 = vadd.f32 %v1071_v46, %v2877_v48 }
 0x44c   :  { %v1120_v9 = vmax.f32 %v1072_v30, 0.0 }
 0x44e   :  { %v1152_v62 = vpack.c.bf16 %v1120_v9, %v1120_v9  ;;  %v2968_v9 = vld [vmem:[%s3138_s2 + $0x38] sm:$0xff] }
 0x44f   :  { %1514 = vperm.xlu0 %2462, %v2968_v9  }
 0x450   :  { %v1264_v50 = vunpack.c.l.b16 %v1152_v62  ;;  %v2403_v62 = vld [vmem:[#allocation2 + $0x148] sm:$0xff] }
 0x451   :  { %v1074_v52 = vpop.f32.mrf.mxu3 }
 0x452   :  { %v2915_v13 = vpack.c.b16 %v1264_v50, %v1263_v49  ;;  %v1075_v33 = vadd.f32 %v1074_v52, %v2882_v58  ;;  %v2974_v49 = vld [vmem:[%s3138_s2 + $0x58] sm:$0xff] }
 0x453   :  { %1449 = vmatmul.bf16.gmra.mxu1 %v2403_v62 }
 0x454   :  { %v1121_v55 = vmax.f32 %v1075_v33, 0.0  ;;  %v2980_v33 = vld [vmem:[%s3138_s2 + $0x48] sm:$0xff] }
 0x456   :  { %v1153_v61 = vpack.c.bf16 %v1121_v55, %v1121_v55 }
 0x458   :  { %v1265_v18 = vunpack.c.l.b16 %v1153_v61 }
 0x459   :  { %v1076_v47 = vpop.f32.mrf.mxu3 }
 0x45a   :  { %v1077_v16 = vadd.f32 %v1076_v47, %v2863_v43 }
 0x45c   :  { %v1122_v45 = vmax.f32 %v1077_v16, 0.0 }
 0x45e   :  { %v1154_v12 = vpack.c.bf16 %v1122_v45, %v1122_v45  ;;  %v2986_v45 = vld [vmem:[%s3138_s2 + $0x10] sm:$0xff] }
 0x45f   :  { %1494 = vperm.xlu0 %2462, %v2986_v45  }
 0x460   :  { %v1266_v44 = vunpack.c.l.b16 %v1154_v12  ;;  %v2992_v12 = vld [vmem:[%s3138_s2 + $0x30] sm:$0xff] }
 0x461   :  { %v1079_v48 = vpop.f32.mrf.mxu3 }
 0x462   :  { %v2919_v57 = vpack.c.b16 %v1266_v44, %v1265_v18  ;;  %v2998_v18 = vld [vmem:[%s3138_s2 + $0x20] sm:$0xff]  ;;  %v3005_v44 = vld [vmem:[%s3138_s2 + $0x8] sm:$0xff] }
 0x467   :  { %1490 = vperm.xlu0 %2462, %v3005_v44  }
 0x469   :  { %v1081_v19 = vpop.f32.mrf.mxu3 }
 0x46a   :  { %v1082_v29 = vadd.f32 %v1081_v19, %v2875_v63  ;;  %v3011_v19 = vld [vmem:[%s3138_s2 + $0x28] sm:$0xff] }
 0x46c   :  { %v1124_v7 = vmax.f32 %v1082_v29, 0.0 }
 0x471   :  { %v1084_v38 = vpop.f32.mrf.mxu3 }
 0x472   :  { %v1085_v10 = vadd.f32 %v1084_v38, %v2845_v26  ;;  %v1080_v26 = vadd.f32 %v1079_v48, %v2855_v1  ;;  %v1156_v1 = vpack.c.bf16 %v1124_v7, %v1124_v7  ;;  %v2404_v48 = vld [vmem:[#allocation2 + $0x150] sm:$0xff]  ;;  %v3025_v38 = vld [vmem:[%s3138_s2] sm:$0xff] }
 0x473   :  { %1454 = vmatmul.bf16.gmra.mxu1 %v2404_v48 }
 0x474   :  { %v1123_v59 = vmax.f32 %v1080_v26, 0.0  ;;  %v1268_v55 = vunpack.c.l.b16 %v1156_v1 }
 0x476   :  { %v1155_v50 = vpack.c.bf16 %v1123_v59, %v1123_v59 }
 0x478   :  { %v1267_v16 = vunpack.c.l.b16 %v1155_v50 }
 0x479   :  { %v1086_v60 = vpop.f32.mrf.mxu3 }
 0x47a   :  { %v1087_v54 = vadd.f32 %v1086_v60, %v2849_v2  ;;  %v1125_v2 = vmax.f32 %v1085_v10, 0.0  ;;  %v1279_v61 = vpack.c.b16 %v1268_v55, %v1267_v16  ;;  %v2410_v60 = vld [vmem:[#allocation2 + $0x180] sm:$0xff] }
 0x47c   :  { %v1126_v53 = vmax.f32 %v1087_v54, 0.0  ;;  %v1157_v5 = vpack.c.bf16 %v1125_v2, %v1125_v2 }
 0x47e   :  { %v1158_v42 = vpack.c.bf16 %v1126_v53, %v1126_v53  ;;  %v1269_v52 = vunpack.c.l.b16 %v1157_v5 }
 0x480   :  { %v1270_v30 = vunpack.c.l.b16 %v1158_v42 }
 0x481   :  { %v1089_v3 = vpop.f32.mrf.mxu3 }
 0x482   :  { %v1280_v47 = vpack.c.b16 %v1270_v30, %v1269_v52 }
 0x489   :  { %v1091_v20 = vpop.f32.mrf.mxu3 }
 0x48a   :  { %v1092_v43 = vadd.f32 %v1091_v20, %v2841_v37  ;;  %v2939_v37 = vld [vmem:[%s3138_s2 + $0x60] sm:$0xff] }
 0x48b   :  { %1534 = vperm.xlu1 %2463, %v2939_v37   ;;  %v2406_v20 = vld [vmem:[#allocation2 + $0x160] sm:$0xff] }
 0x48c   :  { %v1128_v27 = vmax.f32 %v1092_v43, 0.0  ;;  %v2414_v43 = vld [vmem:[#allocation2 + $0x1a0] sm:$0xff] }
 0x48e   :  { %v1160_v17 = vpack.c.bf16 %v1128_v27, %v1128_v27 }
 0x490   :  { %v1272_v22 = vunpack.c.l.b16 %v1160_v17 }
 0x491   :  { %v1094_v0 = vpop.f32.mrf.mxu3 }
 0x492   :  { %v1095_v58 = vadd.f32 %v1094_v0, %v2833_v15  ;;  %v1090_v15 = vadd.f32 %v1089_v3, %v2853_v39  ;;  %v2411_v3 = vld [vmem:[#allocation2 + $0x188] sm:$0xff]  ;;  %v2412_v0 = vld [vmem:[#allocation2 + $0x190] sm:$0xff] }
 0x493   :  { %1526 = vperm.xlu1 %2463, %v2962_v4  }
 0x494   :  { %v1129_v11 = vmax.f32 %v1095_v58, 0.0  ;;  %v1127_v28 = vmax.f32 %v1090_v15, 0.0  ;;  %v2413_v58 = vld [vmem:[#allocation2 + $0x198] sm:$0xff] }
 0x495   :  { %v2409_v15 = vld [vmem:[#allocation2 + $0x178] sm:$0xff] }
 0x496   :  { %v1161_v39 = vpack.c.bf16 %v1129_v11, %v1129_v11  ;;  %v1159_v63 = vpack.c.bf16 %v1127_v28, %v1127_v28  ;;  %v3029_v11 = vpop.permute.xlu2 %1542 }
 0x498   :  { %v1273_v32 = vunpack.c.l.b16 %v1161_v39  ;;  %v1271_v46 = vunpack.c.l.b16 %v1159_v63  ;;  %v2417_v39 = vld [vmem:[#allocation2 + $0x1b8] sm:$0xff] }
 0x499   :  { %v1096_v41 = vpop.f32.mrf.mxu3  ;;  %v3033_v54 = vpop.permute.xlu0 %1546 }
 0x49a   :  { %v1097_v34 = vadd.f32 %v1096_v41, %v2835_v35  ;;  %v2955_v35 = vld [vmem:[%s3138_s2 + $0x68] sm:$0xff]  ;;  %v1281_v23 = vpack.c.b16 %v1272_v22, %v1271_v46  ;;  %v2416_v41 = vld [vmem:[#allocation2 + $0x1b0] sm:$0xff] }
 0x49b   :  { %1538 = vperm.xlu2 %2461, %v2955_v35   ;;  %1522 = vperm.xlu1 %2463, %v2980_v33  }
 0x49c   :  { %v1130_v31 = vmax.f32 %v1097_v34, 0.0 }
 0x49e   :  { %v1162_v51 = vpack.c.bf16 %v1130_v31, %v1130_v31 }
 0x4a0   :  { %v1274_v36 = vunpack.c.l.b16 %v1162_v51 }
 0x4a2   :  { %v1282_v14 = vpack.c.b16 %v1274_v36, %v1273_v32 }
 0x4a3   :  { %1530 = vperm.xlu2 %2461, %v2974_v49   ;;  %1502 = vperm.xlu1 %2463, %v2998_v18  }
 0x4a4   :  { %1291 = vmatpush.bf16.msrb.mxu0 %v1282_v14 }
 0x4a8   :  { %1292 = vmatpush.bf16.msrb.mxu0 %v1281_v23 }
 0x4ab   :  { %1510 = vperm.xlu2 %2461, %v2992_v12  }
 0x4ac   :  { %1293 = vmatpush.bf16.msrb.mxu0 %v1280_v47 }
 0x4ad   :  { %v3037_v10 = vpop.permute.xlu0 %1518 }
 0x4b0   :  { %1294 = vmatpush.bf16.msrb.mxu0 %v1279_v61 }
 0x4b3   :  { %1506 = vperm.xlu2 %2461, %v3011_v19  }
 0x4b4   :  { %1295 = vmatpush.bf16.msrb.mxu0 %v2919_v57  ;;  %v3018_v57 = vld [vmem:[%s3138_s2 + $0x18] sm:$0xff] }
 0x4b5   :  { %1498 = vperm.xlu1 %2463, %v3018_v57  }
 0x4b8   :  { %1296 = vmatpush.bf16.msrb.mxu0 %v2915_v13  ;;  %v2405_v13 = vld [vmem:[#allocation2 + $0x158] sm:$0xff] }
 0x4b9   :  { %1459 = vmatmul.bf16.gmra.mxu1 %v2405_v13 }
 0x4bb   :  { %1486 = vperm.xlu2 %2461, %v3025_v38  }
 0x4bc   :  { %1297 = vmatpush.bf16.msrb.mxu0 %v2911_v6  ;;  %v2407_v6 = vld [vmem:[#allocation2 + $0x168] sm:$0xff] }
 0x4c0   :  { %1298 = vmatpush.bf16.msrb.mxu0 %v2904_v25  ;;  %v2415_v25 = vld [vmem:[#allocation2 + $0x1a8] sm:$0xff]  ;;  %v1445_v27 = vpop.f32.mrf.mxu1 }
 0x4c1   :  { %v1515_v53 = vpop.permute.xlu0 %1514 }
 0x4c3   :  { %1299 = vmatmul.bf16.vlgmr.msrb.gmra.mxu0 %v2410_v60 }
 0x4c8   :  { %v1447_v28 = vpop.f32.mrf.mxu1 }
 0x4c9   :  { %1464 = vmatmul.bf16.gmra.mxu1 %v2406_v20 }
 0x4d0   :  { %v1450_v17 = vpop.f32.mrf.mxu1 }
 0x4d1   :  { %v1495_v2 = vpop.permute.xlu0 %1494 }
 0x4d3   :  { %1304 = vmatmul.bf16.gmra.mxu0 %v2411_v3 }
 0x4d8   :  { %v1452_v32 = vpop.f32.mrf.mxu1 }
 0x4d9   :  { %1469 = vmatmul.bf16.gmra.mxu1 %v2407_v6  ;;  %v1491_v14 = vpop.permute.xlu0 %1490 }
 0x4e3   :  { %1309 = vmatmul.bf16.gmra.mxu0 %v2412_v0 }
 0x4e9   :  { %1474 = vmatmul.bf16.gmra.mxu1 %v2408_v8 }
 0x4f0   :  { %v1455_v46 = vpop.f32.mrf.mxu1 }
 0x4f3   :  { %1314 = vmatmul.bf16.gmra.mxu0 %v2413_v58 }
 0x4f5   :  { %v3031_v56 = vpop.permute.xlu2 %1538 }
 0x4f8   :  { %v1457_v47 = vpop.f32.mrf.mxu1 }
 0x4f9   :  { %1479 = vmatmul.bf16.gmra.mxu1 %v2409_v15 }
 0x4fd   :  { %v3035_v34 = vpop.permute.xlu2 %1530  ;;  %v3039_v31 = vpop.permute.xlu1 %1534 }
 0x503   :  { %1319 = vmatmul.bf16.gmra.mxu0 %v2414_v43 }
 0x505   :  { %v1511_v29 = vpop.permute.xlu2 %1510  ;;  %v3041_v51 = vpop.permute.xlu1 %1526 }
 0x50d   :  { %v1507_v26 = vpop.permute.xlu2 %1506  ;;  %v3043_v7 = vpop.permute.xlu1 %1522 }
 0x513   :  { %1324 = vmatmul.bf16.gmra.mxu0 %v2415_v25 }
 0x515   :  { %v1487_v42 = vpop.permute.xlu2 %1486  ;;  %v1503_v62 = vpop.permute.xlu1 %1502 }
 0x523   :  { %1329 = vmatmul.bf16.gmra.mxu0 %v2416_v41 }
 0x527   :  { %v1499_v61 = vpop.permute.xlu1 %1498 }
 0x533   :  { %1334 = vmatmul.bf16.gmra.mxu0 %v2417_v39 }
 0x536   :  { %v1460_v0 = vpop.f32.mrf.mxu1 }
 0x53e   :  { %v1462_v15 = vpop.f32.mrf.mxu1 }
 0x540   :  { %v1300_v63 = vpop.f32.mrf.mxu0 }
 0x541   :  { %v1446_v36 = vadd.f32 %v1445_v27, %v1300_v63 }
 0x543   :  { %v1549_v59 = vadd.f32 %v1487_v42, %v1446_v36 }
 0x545   :  { %v1565_v30 = vmax.f32 %v1549_v59, 0.0 }
 0x548   :  { %v1302_v22 = vpop.f32.mrf.mxu0 }
 0x549   :  { %v1448_v5 = vadd.f32 %v1447_v28, %v1302_v22 }
 0x54b   :  { %v1550_v1 = vadd.f32 %v1491_v14, %v1448_v5 }
 0x54d   :  { %v1566_v23 = vmax.f32 %v1550_v1, 0.0 }
 0x54f   :  { %v3045_v50 = vpack.c.bf16 %v1566_v23, %v1565_v30 }
 0x550   :  { %v1305_v52 = vpop.f32.mrf.mxu0 }
 0x551   :  { %v1451_v55 = vadd.f32 %v1450_v17, %v1305_v52 }
 0x553   :  { %v1551_v48 = vadd.f32 %v1495_v2, %v1451_v55 }
 0x555   :  { %v1567_v3 = vmax.f32 %v1551_v48, 0.0 }
 0x558   :  { %v1307_v16 = vpop.f32.mrf.mxu0 }
 0x559   :  { %v1453_v60 = vadd.f32 %v1452_v32, %v1307_v16  ;;  %v1465_v32 = vpop.f32.mrf.mxu1 }
 0x55b   :  { %v1552_v13 = vadd.f32 %v1499_v61, %v1453_v60  ;;  %v2552_v60 = vmov 5  }
 0x55c   :  { %2464 = vset.pattern.permute.xlu1 %v2552_v60  ;;  %2465 = vset.pattern.permute.xlu2 %v2552_v60 }
 0x55d   :  { %v1568_v20 = vmax.f32 %v1552_v13, 0.0  ;;  %1662 = vperm.xlu1 %2464, %v2932_v24   ;;  %1666 = vperm.xlu2 %2465, %v2926_v40  }
 0x55e   :  { %2466 = vset.pattern.permute.xlu0 %v2552_v60 }
 0x55f   :  { %v3047_v6 = vpack.c.bf16 %v1568_v20, %v1567_v3  ;;  %1654 = vperm.xlu0 %2466, %v2939_v37  }
 0x560   :  { %v1310_v58 = vpop.f32.mrf.mxu0 }
 0x561   :  { %v1456_v8 = vadd.f32 %v1455_v46, %v1310_v58  ;;  %v1467_v59 = vpop.f32.mrf.mxu1 }
 0x563   :  { %v1553_v25 = vadd.f32 %v1503_v62, %v1456_v8 }
 0x565   :  { %v1569_v28 = vmax.f32 %v1553_v25, 0.0  ;;  %1658 = vperm.xlu1 %2464, %v2955_v35   ;;  %1646 = vperm.xlu2 %2465, %v2962_v4  }
 0x567   :  { %1642 = vperm.xlu0 %2466, %v2980_v33  }
 0x568   :  { %v1312_v43 = vpop.f32.mrf.mxu0 }
 0x569   :  { %v1458_v41 = vadd.f32 %v1457_v47, %v1312_v43  ;;  %v1470_v62 = vpop.f32.mrf.mxu1 }
 0x56b   :  { %v1554_v27 = vadd.f32 %v1507_v26, %v1458_v41 }
 0x56d   :  { %v1570_v39 = vmax.f32 %v1554_v27, 0.0  ;;  %1650 = vperm.xlu1 %2464, %v2974_v49   ;;  %1638 = vperm.xlu2 %2465, %v2949_v21  }
 0x56f   :  { %v3049_v17 = vpack.c.bf16 %v1570_v39, %v1569_v28  ;;  %1622 = vperm.xlu0 %2466, %v2998_v18  }
 0x570   :  { %v1315_v63 = vpop.f32.mrf.mxu0 }
 0x571   :  { %v1461_v2 = vadd.f32 %v1460_v0, %v1315_v63  ;;  %v1472_v55 = vpop.f32.mrf.mxu1 }
 0x573   :  { %v1555_v42 = vadd.f32 %v1511_v29, %v1461_v2 }
 0x575   :  { %v1571_v5 = vmax.f32 %v1555_v42, 0.0  ;;  %1630 = vperm.xlu1 %2464, %v2992_v12   ;;  %1634 = vperm.xlu2 %2465, %v2968_v9  }
 0x577   :  { %1618 = vperm.xlu0 %2466, %v3018_v57  }
 0x578   :  { %v1317_v36 = vpop.f32.mrf.mxu0 }
 0x579   :  { %v1463_v22 = vadd.f32 %v1462_v15, %v1317_v36  ;;  %v1475_v16 = vpop.f32.mrf.mxu1 }
 0x57b   :  { %v1556_v14 = vadd.f32 %v1515_v53, %v1463_v22 }
 0x57d   :  { %v1572_v1 = vmax.f32 %v1556_v14, 0.0  ;;  %1626 = vperm.xlu1 %2464, %v3011_v19   ;;  %1614 = vperm.xlu2 %2465, %v2986_v45  }
 0x57f   :  { %v3051_v46 = vpack.c.bf16 %v1572_v1, %v1571_v5 }
 0x580   :  { %v1320_v30 = vpop.f32.mrf.mxu0 }
 0x581   :  { %v1466_v23 = vadd.f32 %v1465_v32, %v1320_v30  ;;  %v1477_v48 = vpop.f32.mrf.mxu1 }
 0x585   :  { %1606 = vperm.xlu1 %2464, %v3025_v38   ;;  %1610 = vperm.xlu2 %2465, %v3005_v44  }
 0x588   :  { %v1322_v26 = vpop.f32.mrf.mxu0 }
 0x589   :  { %v1480_v53 = vpop.f32.mrf.mxu1  ;;  %v1468_v32 = vadd.f32 %v1467_v59, %v1322_v26  ;;  %v1557_v59 = vadd.f32 %v3037_v10, %v1466_v23  ;;  %v2418_v10 = vld [vmem:[#allocation2 + $0x1c0] sm:$0xff]  ;;  %v2420_v23 = vld [vmem:[#allocation2 + $0x1d0] sm:$0xff] }
 0x58a   :  { %v2422_v26 = vld [vmem:[#allocation2 + $0x1e0] sm:$0xff] }
 0x58b   :  { %v1573_v30 = vmax.f32 %v1557_v59, 0.0 }
 0x590   :  { %v1325_v52 = vpop.f32.mrf.mxu0 }
 0x591   :  { %v1482_v0 = vpop.f32.mrf.mxu1  ;;  %v1471_v28 = vadd.f32 %v1470_v62, %v1325_v52  ;;  %v2421_v62 = vld [vmem:[#allocation2 + $0x1d8] sm:$0xff]  ;;  %v2423_v52 = vld [vmem:[#allocation2 + $0x1e8] sm:$0xff] }
 0x598   :  { %v1327_v47 = vpop.f32.mrf.mxu0 }
 0x599   :  { %v1473_v25 = vadd.f32 %v1472_v55, %v1327_v47 }
 0x59b   :  { %v1560_v36 = vadd.f32 %v3035_v34, %v1473_v25 }
 0x5a0   :  { %v1330_v61 = vpop.f32.mrf.mxu0 }
 0x5a1   :  { %v1476_v8 = vadd.f32 %v1475_v16, %v1330_v61  ;;  %v2425_v61 = vld [vmem:[#allocation2 + $0x1f8] sm:$0xff] }
 0x5a3   :  { %v1561_v39 = vadd.f32 %v3039_v31, %v1476_v8 }
 0x5a5   :  { %v1577_v14 = vmax.f32 %v1561_v39, 0.0 }
 0x5a8   :  { %v1332_v29 = vpop.f32.mrf.mxu0 }
 0x5a9   :  { %v1478_v20 = vadd.f32 %v1477_v48, %v1332_v29 }
 0x5ab   :  { %v1562_v41 = vadd.f32 %v3031_v56, %v1478_v20  ;;  %v1558_v56 = vadd.f32 %v3043_v7, %v1468_v32  ;;  %v2419_v7 = vld [vmem:[#allocation2 + $0x1c8] sm:$0xff] }
 0x5ad   :  { %v1578_v42 = vmax.f32 %v1562_v41, 0.0  ;;  %v1574_v34 = vmax.f32 %v1558_v56, 0.0 }
 0x5af   :  { %v1587_v31 = vpack.c.bf16 %v1578_v42, %v1577_v14 }
 0x5b0   :  { %v1335_v13 = vpop.f32.mrf.mxu0 }
 0x5b1   :  { %v1481_v3 = vadd.f32 %v1480_v53, %v1335_v13 }
 0x5b3   :  { %v1563_v43 = vadd.f32 %v3029_v11, %v1481_v3  ;;  %v1559_v11 = vadd.f32 %v3041_v51, %v1471_v28  ;;  %v1585_v51 = vpack.c.bf16 %v1574_v34, %v1573_v30 }
 0x5b5   :  { %v1579_v63 = vmax.f32 %v1563_v43, 0.0  ;;  %v1575_v5 = vmax.f32 %v1559_v11, 0.0 }
 0x5b8   :  { %v1337_v58 = vpop.f32.mrf.mxu0 }
 0x5b9   :  { %v1483_v15 = vadd.f32 %v1482_v0, %v1337_v58 }
 0x5bb   :  { %v1564_v27 = vadd.f32 %v3033_v54, %v1483_v15  ;;  %v1576_v54 = vmax.f32 %v1560_v36, 0.0 }
 0x5bd   :  { %v1580_v2 = vmax.f32 %v1564_v27, 0.0  ;;  %v1586_v1 = vpack.c.bf16 %v1576_v54, %v1575_v5 }
 0x5bf   :  { %v1588_v22 = vpack.c.bf16 %v1580_v2, %v1579_v63 }
 0x5c1   :  { %1717 = vmatpush.bf16.msra.mxu2 %v1588_v22 }
 0x5c5   :  { %1718 = vmatpush.bf16.msra.mxu2 %v1587_v31 }
 0x5c9   :  { %1719 = vmatpush.bf16.msra.mxu2 %v1586_v1 }
 0x5cd   :  { %1720 = vmatpush.bf16.msra.mxu2 %v1585_v51 }
 0x5cf   :  { %v3081_v55 = vpop.permute.xlu1 %1662 }
 0x5d1   :  { %1721 = vmatpush.bf16.msra.mxu2 %v3051_v46  ;;  %v3083_v46 = vpop.permute.xlu2 %1666  ;;  %v1655_v29 = vpop.permute.xlu0 %1654 }
 0x5d5   :  { %1722 = vmatpush.bf16.msra.mxu2 %v3049_v17  ;;  %v2424_v17 = vld [vmem:[#allocation2 + $0x1f0] sm:$0xff] }
 0x5d9   :  { %1723 = vmatpush.bf16.msra.mxu2 %v3047_v6  ;;  %v3085_v6 = vpop.permute.xlu1 %1658  ;;  %v3093_v20 = vpop.permute.xlu0 %1642 }
 0x5dd   :  { %1724 = vmatpush.bf16.msra.mxu2 %v3045_v50  ;;  %v3087_v50 = vpop.permute.xlu2 %1646 }
 0x5e0   :  { %1725 = vmatmul.bf16.vlgmr.msra.gmra.mxu2 %v2418_v10 }
 0x5e1   :  { %v3089_v47 = vpop.permute.xlu1 %1650  ;;  %v1623_v27 = vpop.permute.xlu0 %1622 }
 0x5e5   :  { %v3091_v16 = vpop.permute.xlu2 %1638 }
 0x5e9   :  { %v1631_v48 = vpop.permute.xlu1 %1630  ;;  %v1619_v63 = vpop.permute.xlu0 %1618 }
 0x5ed   :  { %v1635_v60 = vpop.permute.xlu2 %1634 }
 0x5f0   :  { %1730 = vmatmul.bf16.gmra.mxu2 %v2419_v7 }
 0x5f1   :  { %v1627_v53 = vpop.permute.xlu1 %1626 }
 0x5f5   :  { %v1615_v13 = vpop.permute.xlu2 %1614 }
 0x5f9   :  { %v1607_v0 = vpop.permute.xlu1 %1606 }
 0x5fd   :  { %v1611_v58 = vpop.permute.xlu2 %1610 }
 0x600   :  { %1735 = vmatmul.bf16.gmra.mxu2 %v2420_v23 }
 0x610   :  { %1740 = vmatmul.bf16.gmra.mxu2 %v2421_v62 }
 0x620   :  { %1745 = vmatmul.bf16.gmra.mxu2 %v2422_v26 }
 0x630   :  { %1750 = vmatmul.bf16.gmra.mxu2 %v2423_v52 }
 0x640   :  { %1755 = vmatmul.bf16.gmra.mxu2 %v2424_v17 }
 0x650   :  { %1760 = vmatmul.bf16.gmra.mxu2 %v2425_v61 }
 0x663   :  { %v1726_v3 = vpop.f32.mrf.mxu2 }
 0x664   :  { %v1727_v8 = vadd.f32 %v1726_v3, %v1607_v0  ;;  %v2553_v0 = vmov 6  }
 0x665   :  { %2467 = vset.pattern.permute.xlu0 %v2553_v0  ;;  %2468 = vset.pattern.permute.xlu1 %v2553_v0 }
 0x666   :  { %v1766_v25 = vmax.f32 %v1727_v8, 0.0  ;;  %1863 = vperm.xlu0 %2467, %v2932_v24   ;;  %1867 = vperm.xlu1 %2468, %v2926_v40  }
 0x667   :  { %2469 = vset.pattern.permute.xlu2 %v2553_v0 }
 0x668   :  { %1855 = vperm.xlu2 %2469, %v2939_v37  }
 0x66b   :  { %v1728_v43 = vpop.f32.mrf.mxu2 }
 0x66c   :  { %v1729_v15 = vadd.f32 %v1728_v43, %v1611_v58 }
 0x66e   :  { %v1767_v41 = vmax.f32 %v1729_v15, 0.0  ;;  %1851 = vperm.xlu0 %2467, %v2974_v49   ;;  %1859 = vperm.xlu1 %2468, %v2955_v35  }
 0x670   :  { %v3095_v28 = vpack.c.bf16 %v1767_v41, %v1766_v25  ;;  %1847 = vperm.xlu2 %2469, %v2962_v4   ;;  %v2432_v25 = vld [vmem:[#allocation2 + $0x230] sm:$0xff] }
 0x673   :  { %v1731_v39 = vpop.f32.mrf.mxu2 }
 0x674   :  { %v1732_v2 = vadd.f32 %v1731_v39, %v1615_v13  ;;  %v2433_v39 = vld [vmem:[#allocation2 + $0x238] sm:$0xff] }
 0x676   :  { %v1768_v42 = vmax.f32 %v1732_v2, 0.0  ;;  %1831 = vperm.xlu0 %2467, %v2992_v12   ;;  %1839 = vperm.xlu1 %2468, %v2949_v21  }
 0x678   :  { %1843 = vperm.xlu2 %2469, %v2980_v33  }
 0x67b   :  { %v1733_v32 = vpop.f32.mrf.mxu2 }
 0x67c   :  { %v1734_v36 = vadd.f32 %v1733_v32, %v1619_v63 }
 0x67e   :  { %v1769_v22 = vmax.f32 %v1734_v36, 0.0  ;;  %1827 = vperm.xlu0 %2467, %v3011_v19   ;;  %1835 = vperm.xlu1 %2468, %v2968_v9   ;;  %v2426_v9 = vld [vmem:[#allocation2 + $0x200] sm:$0xff]  ;;  %v2428_v19 = vld [vmem:[#allocation2 + $0x210] sm:$0xff] }
 0x680   :  { %v3097_v11 = vpack.c.bf16 %v1769_v22, %v1768_v42  ;;  %1823 = vperm.xlu2 %2469, %v2998_v18   ;;  %v2427_v18 = vld [vmem:[#allocation2 + $0x208] sm:$0xff] }
 0x683   :  { %v1736_v14 = vpop.f32.mrf.mxu2 }
 0x684   :  { %v1737_v56 = vadd.f32 %v1736_v14, %v1623_v27 }
 0x686   :  { %v1770_v59 = vmax.f32 %v1737_v56, 0.0  ;;  %1807 = vperm.xlu0 %2467, %v3025_v38   ;;  %1815 = vperm.xlu1 %2468, %v2986_v45   ;;  %v2429_v38 = vld [vmem:[#allocation2 + $0x218] sm:$0xff]  ;;  %v2430_v45 = vld [vmem:[#allocation2 + $0x220] sm:$0xff] }
 0x688   :  { %1819 = vperm.xlu2 %2469, %v3018_v57  }
 0x68b   :  { %v1738_v54 = vpop.f32.mrf.mxu2 }
 0x68c   :  { %v1739_v31 = vadd.f32 %v1738_v54, %v1627_v53 }
 0x68e   :  { %v1771_v5 = vmax.f32 %v1739_v31, 0.0  ;;  %1811 = vperm.xlu1 %2468, %v3005_v44  }
 0x690   :  { %v1784_v34 = vpack.c.bf16 %v1771_v5, %v1770_v59 }
 0x693   :  { %v1741_v1 = vpop.f32.mrf.mxu2 }
 0x694   :  { %v1742_v30 = vadd.f32 %v1741_v1, %v1631_v48 }
 0x696   :  { %v1772_v7 = vmax.f32 %v1742_v30, 0.0 }
 0x69b   :  { %v1743_v51 = vpop.f32.mrf.mxu2 }
 0x69c   :  { %v1744_v10 = vadd.f32 %v1743_v51, %v1635_v60 }
 0x69e   :  { %v1773_v23 = vmax.f32 %v1744_v10, 0.0 }
 0x6a0   :  { %v1785_v62 = vpack.c.bf16 %v1773_v23, %v1772_v7 }
 0x6a3   :  { %v1746_v26 = vpop.f32.mrf.mxu2 }
 0x6a4   :  { %v1747_v21 = vadd.f32 %v1746_v26, %v3091_v16  ;;  %v2431_v16 = vld [vmem:[#allocation2 + $0x228] sm:$0xff] }
 0x6ab   :  { %v1748_v52 = vpop.f32.mrf.mxu2 }
 0x6b3   :  { %v1751_v17 = vpop.f32.mrf.mxu2 }
 0x6bb   :  { %v1753_v61 = vpop.f32.mrf.mxu2 }
 0x6bc   :  { %v1754_v35 = vadd.f32 %v1753_v61, %v3089_v47 }
 0x6c3   :  { %v1756_v13 = vpop.f32.mrf.mxu2 }
 0x6c4   :  { %v1757_v40 = vadd.f32 %v1756_v13, %v1655_v29  ;;  %v1774_v29 = vmax.f32 %v1747_v21, 0.0 }
 0x6c6   :  { %v1778_v43 = vmax.f32 %v1757_v40, 0.0 }
 0x6cb   :  { %v1758_v3 = vpop.f32.mrf.mxu2 }
 0x6cc   :  { %v1759_v58 = vadd.f32 %v1758_v3, %v3085_v6  ;;  %v1749_v6 = vadd.f32 %v1748_v52, %v3093_v20 }
 0x6ce   :  { %v1779_v49 = vmax.f32 %v1759_v58, 0.0  ;;  %v1775_v33 = vmax.f32 %v1749_v6, 0.0 }
 0x6d0   :  { %v1788_v15 = vpack.c.bf16 %v1779_v49, %v1778_v43 }
 0x6d3   :  { %v1761_v48 = vpop.f32.mrf.mxu2 }
 0x6d4   :  { %v1762_v60 = vadd.f32 %v1761_v48, %v3081_v55  ;;  %v1752_v55 = vadd.f32 %v1751_v17, %v3087_v50  ;;  %v1786_v50 = vpack.c.bf16 %v1775_v33, %v1774_v29 }
 0x6d6   :  { %v1780_v24 = vmax.f32 %v1762_v60, 0.0  ;;  %v1776_v12 = vmax.f32 %v1752_v55, 0.0 }
 0x6d8   :  { %v1868_v57 = vpop.permute.xlu1 %1867  ;;  %v1864_v20 = vpop.permute.xlu0 %1863 }
 0x6db   :  { %v1763_v53 = vpop.f32.mrf.mxu2 }
 0x6dc   :  { %v1764_v8 = vadd.f32 %v1763_v53, %v3083_v46  ;;  %v1777_v46 = vmax.f32 %v1754_v35, 0.0 }
 0x6de   :  { %v1781_v37 = vmax.f32 %v1764_v8, 0.0  ;;  %v1787_v47 = vpack.c.bf16 %v1777_v46, %v1776_v12 }
 0x6e0   :  { %v1789_v4 = vpack.c.bf16 %v1781_v37, %v1780_v24  ;;  %v1860_v44 = vpop.permute.xlu1 %1859  ;;  %v1852_v41 = vpop.permute.xlu0 %1851 }
 0x6e2   :  { %1918 = vmatpush.bf16.msra.mxu0 %v1789_v4 }
 0x6e6   :  { %1919 = vmatpush.bf16.msra.mxu0 %v1788_v15 }
 0x6e8   :  { %v3124_v27 = vpop.permute.xlu1 %1839  ;;  %v1832_v63 = vpop.permute.xlu0 %1831 }
 0x6ea   :  { %1920 = vmatpush.bf16.msra.mxu0 %v1787_v47 }
 0x6ee   :  { %1921 = vmatpush.bf16.msra.mxu0 %v1786_v50 }
 0x6f0   :  { %v1836_v2 = vpop.permute.xlu1 %1835  ;;  %v1828_v36 = vpop.permute.xlu0 %1827 }
 0x6f2   :  { %1922 = vmatpush.bf16.msra.mxu0 %v1785_v62 }
 0x6f6   :  { %1923 = vmatpush.bf16.msra.mxu0 %v1784_v34 }
 0x6f8   :  { %v1816_v42 = vpop.permute.xlu1 %1815  ;;  %v1808_v14 = vpop.permute.xlu0 %1807 }
 0x6fa   :  { %1924 = vmatpush.bf16.msra.mxu0 %v3097_v11 }
 0x6fe   :  { %1925 = vmatpush.bf16.msra.mxu0 %v3095_v28  ;;  %v1856_v28 = vpop.permute.xlu2 %1855 }
 0x700   :  { %v1812_v56 = vpop.permute.xlu1 %1811 }
 0x701   :  { %1926 = vmatmul.bf16.vlgmr.msra.gmra.mxu0 %v2426_v9 }
 0x706   :  { %v1848_v32 = vpop.permute.xlu2 %1847 }
 0x70e   :  { %v1844_v11 = vpop.permute.xlu2 %1843 }
 0x711   :  { %1931 = vmatmul.bf16.gmra.mxu0 %v2427_v18 }
 0x716   :  { %v1824_v1 = vpop.permute.xlu2 %1823 }
 0x71e   :  { %v1820_v10 = vpop.permute.xlu2 %1819 }
 0x721   :  { %1936 = vmatmul.bf16.gmra.mxu0 %v2428_v19 }
 0x731   :  { %1941 = vmatmul.bf16.gmra.mxu0 %v2429_v38 }
 0x741   :  { %1946 = vmatmul.bf16.gmra.mxu0 %v2430_v45 }
 0x751   :  { %1951 = vmatmul.bf16.gmra.mxu0 %v2431_v16  ;;  %v1993_v16 = vld [vmem:[%s3138_s2] sm:$0xff]  ;;  %s2555_s2 = smov [#allocation5]  }
 0x752   :  { %s2049_s5 = sshll.u32 %s2555_s2, 4  ;;  %s2050_s5 = int_to_ptr.vmem [resolvable:$true] %s2049_s5 }
 0x761   :  { %1956 = vmatmul.bf16.gmra.mxu0 %v2432_v25 }
 0x771   :  { %1961 = vmatmul.bf16.gmra.mxu0 %v2433_v39 }
 0x77e   :  { %v1927_v22 = vpop.f32.mrf.mxu0 }
 0x77f   :  { %v1928_v54 = vadd.f32 %v1927_v22, %v1808_v14 }
 0x781   :  { %v1967_v5 = vmax.f32 %v1928_v54, 0.0 }
 0x786   :  { %v1929_v31 = vpop.f32.mrf.mxu0 }
 0x787   :  { %v1930_v59 = vadd.f32 %v1929_v31, %v1812_v56 }
 0x789   :  { %v1968_v34 = vmax.f32 %v1930_v59, 0.0 }
 0x78b   :  { %v3126_v30 = vpack.c.bf16 %v1968_v34, %v1967_v5 }
 0x78e   :  { %v1932_v51 = vpop.f32.mrf.mxu0 }
 0x78f   :  { %v1933_v7 = vadd.f32 %v1932_v51, %v1816_v42 }
 0x791   :  { %v1969_v26 = vmax.f32 %v1933_v7, 0.0 }
 0x796   :  { %v1934_v23 = vpop.f32.mrf.mxu0 }
 0x797   :  { %v1935_v62 = vadd.f32 %v1934_v23, %v1820_v10 }
 0x799   :  { %v1970_v52 = vmax.f32 %v1935_v62, 0.0 }
 0x79b   :  { %v1984_v17 = vpack.c.bf16 %v1970_v52, %v1969_v26 }
 0x79e   :  { %v1937_v61 = vpop.f32.mrf.mxu0 }
 0x79f   :  { %v1938_v13 = vadd.f32 %v1937_v61, %v1824_v1 }
 0x7a1   :  { %v1971_v48 = vmax.f32 %v1938_v13, 0.0 }
 0x7a6   :  { %v1939_v3 = vpop.f32.mrf.mxu0 }
 0x7a7   :  { %v1940_v0 = vadd.f32 %v1939_v3, %v1828_v36 }
 0x7a9   :  { %v1972_v60 = vmax.f32 %v1940_v0, 0.0 }
 0x7ab   :  { %v1985_v53 = vpack.c.bf16 %v1972_v60, %v1971_v48 }
 0x7ae   :  { %v1942_v58 = vpop.f32.mrf.mxu0 }
 0x7af   :  { %v1943_v8 = vadd.f32 %v1942_v58, %v1832_v63  ;;  %v2554_v63 = vmov 7  }
 0x7b0   :  { %2470 = vset.pattern.permute.xlu2 %v2554_v63  ;;  %2471 = vset.pattern.permute.xlu0 %v2554_v63 }
 0x7b1   :  { %v1973_v37 = vmax.f32 %v1943_v8, 0.0  ;;  %1997 = vperm.xlu2 %2470, %v1993_v16  }
 0x7b6   :  { %v1944_v40 = vpop.f32.mrf.mxu0 }
 0x7b7   :  { %v1945_v24 = vadd.f32 %v1944_v40, %v1836_v2 }
 0x7b9   :  { %v1974_v35 = vmax.f32 %v1945_v24, 0.0 }
 0x7bb   :  { %v1986_v49 = vpack.c.bf16 %v1974_v35, %v1973_v37 }
 0x7be   :  { %v1947_v4 = vpop.f32.mrf.mxu0 }
 0x7c6   :  { %v1949_v55 = vpop.f32.mrf.mxu0 }
 0x7ce   :  { %v1952_v43 = vpop.f32.mrf.mxu0 }
 0x7cf   :  { %v1953_v25 = vadd.f32 %v1952_v43, %v1848_v32  ;;  %v2434_v32 = vld [vmem:[#allocation2 + $0x240] sm:$0xff] }
 0x7d1   :  { %v1977_v2 = vmax.f32 %v1953_v25, 0.0 }
 0x7d6   :  { %v1954_v6 = vpop.f32.mrf.mxu0 }
 0x7d7   :  { %v1955_v19 = vadd.f32 %v1954_v6, %v1852_v41 }
 0x7de   :  { %v1957_v46 = vpop.f32.mrf.mxu0 }
 0x7df   :  { %v1958_v50 = vadd.f32 %v1957_v46, %v1856_v28  ;;  %v1948_v28 = vadd.f32 %v1947_v4, %v3124_v27 }
 0x7e1   :  { %v1979_v39 = vmax.f32 %v1958_v50, 0.0  ;;  %v1975_v42 = vmax.f32 %v1948_v28, 0.0 }
 0x7e6   :  { %v1959_v15 = vpop.f32.mrf.mxu0 }
 0x7e7   :  { %v1960_v47 = vadd.f32 %v1959_v15, %v1860_v44  ;;  %v1978_v44 = vmax.f32 %v1955_v19, 0.0 }
 0x7e9   :  { %v1980_v38 = vmax.f32 %v1960_v47, 0.0  ;;  %v1988_v36 = vpack.c.bf16 %v1978_v44, %v1977_v2 }
 0x7ee   :  { %v1962_v21 = vpop.f32.mrf.mxu0 }
 0x7ef   :  { %v1963_v12 = vadd.f32 %v1962_v21, %v1864_v20  ;;  %v1950_v20 = vadd.f32 %v1949_v55, %v1844_v11 }
 0x7f1   :  { %v1981_v9 = vmax.f32 %v1963_v12, 0.0  ;;  %v1976_v41 = vmax.f32 %v1950_v20, 0.0 }
 0x7f3   :  { %v1987_v22 = vpack.c.bf16 %v1976_v41, %v1975_v42 }
 0x7f6   :  { %v1964_v33 = vpop.f32.mrf.mxu0 }
 0x7f7   :  { %v1965_v29 = vadd.f32 %v1964_v33, %v1868_v57  ;;  %v1989_v57 = vpack.c.bf16 %v1980_v38, %v1979_v39 }
 0x7f9   :  { %v1982_v18 = vmax.f32 %v1965_v29, 0.0 }
 0x7fb   :  { %v1990_v45 = vpack.c.bf16 %v1982_v18, %v1981_v9 }
 0x7fd   :  { %2010 = vmatpush.bf16.msra.mxu1 %v1990_v45 }
 0x801   :  { %2011 = vmatpush.bf16.msra.mxu1 %v1989_v57 }
 0x805   :  { %2012 = vmatpush.bf16.msra.mxu1 %v1988_v36 }
 0x809   :  { %2013 = vmatpush.bf16.msra.mxu1 %v1987_v22 }
 0x80b   :  { %v1998_v11 = vpop.permute.xlu2 %1997 }
 0x80d   :  { %2014 = vmatpush.bf16.msra.mxu1 %v1986_v49 }
 0x811   :  { %2015 = vmatpush.bf16.msra.mxu1 %v1985_v53 }
 0x815   :  { %2016 = vmatpush.bf16.msra.mxu1 %v1984_v17 }
 0x819   :  { %2017 = vmatpush.bf16.msra.mxu1 %v3126_v30 }
 0x81c   :  { %2018 = vmatmul.bf16.vlgmr.msra.gmra.mxu1 %v2434_v32 }
 0x899   :  { %v2019_v14 = vpop.f32.mrf.mxu1 }
 0x89a   :  { %v2020_v56 = vadd.f32 %v2019_v14, %v1998_v11 }
 0x89c   :  { %v2361_v54 = vmul.f32 -1.442695, %v2020_v56 }
 0x89e   :  { %2472 = vpow2.f32 %v2361_v54 }
 0x8a1   :  { %v2021_v27 = vpop.f32.mrf.mxu1 }
 0x8a4   :  { %v2473_v31 = vpop.eup %2472 }
 0x8a5   :  { %v2026_v59 = vadd.f32 1.0, %v2473_v31 }
 0x8a7   :  { %2474 = vrcp.f32 %v2026_v59  ;;  %v2038_v51 = vand.u32 2147483648, %v2026_v59  ;;  %v2036_v7 = vand.u32 2147483647, %v2026_v59  ;;  %vm2032_vm2 = vweird.f32 %v2026_v59 }
 0x8a9   :  { %v2039_v23 = vor.u32 1.1754944e-38, %v2038_v51  ;;  %vm2037_vm5 = vcmp.eq.f32.partialorder %v2036_v7, 8.507059e+37 }
 0x8ad   :  { %v2475_v5 = vpop.eup %2474 }
 0x8ae   :  { %v2028_v34 = vmul.f32 %v2475_v5, %v2026_v59  ;;  %vm2033_vm1 = vweird.f32 %v2475_v5 }
 0x8af   :  { %vm2034_vm3 = vmor %vm2032_vm2, %vm2033_vm1 }
 0x8b0   :  { %v2029_v1 = vsub.f32 1.0, %v2028_v34 }
 0x8b2   :  { %v2030_v10 = vmul.f32 %v2475_v5, %v2029_v1 }
 0x8b4   :  { %v2031_v30 = vadd.f32 %v2475_v5, %v2030_v10 }
 0x8b6   :  { %v2035_v62 = vsel %vm2034_vm3, %v2475_v5, %v2031_v30 }
 0x8b7   :  { %v2040_v26 = vsel %vm2037_vm5, %v2039_v23, %v2035_v62 }
 0x8b8   :  { %2043 = vst.msk [vmem:[#allocation5] sm:$0x1] %vm2042_vm4, %v2040_v26 }
 0x8b9   :  { %2054 = dma.vmem_to_hbm [thread:$0]  %s2050_s5, 16, %s2052_s8, [#allocation4]  }
 0x8ba   :  { %2542 = dma.done.wait [#allocation4], 16  }
 0x8bb   :  { %2543 = vsyncadd [#allocation4], 4294967280 }
 0x8bc   :  { %2059 = vsyncpa [#allocation3], 1 }
 0x8bd   :  { %2060 = vsyncpa [#allocation4], 1 }

</bundles_post_ra>
